<compile_context>
chip_gen: v7x
topology: tpu7x:2x2x1
jax: 0.10.0
libtpu: 0.0.40
codegen_flags: <defaults>
</compile_context>

<pallas_src>
import functools

import jax
import jax.numpy as jnp
import numpy as np
from jax.experimental import pallas as pl
from jax.experimental.pallas import tpu as pltpu


# ----------------------------------------------------------------------------
# Pallas kernel: one (batch, chunk-group) tile of the fused Mamba block
# ----------------------------------------------------------------------------
def mamba_kernel(x_ref, gamma_ref, beta_ref, w_in_ref, b_in_ref, wconv_ref,
                 kbd_ref, w_out_ref, b_out_ref, dvec_ref, o_ref, halo_ref,
                 *, d_conv, d_inner, eps):
    j = pl.program_id(1)                      # chunk-group index within batch

    x = x_ref[0]                              # [C, T] f32 (pre-norm residual)
    T = x.shape[1]

    # ---- LayerNorm over channels (sublane reduction; f32 math) --------------
    mean = jnp.mean(x, axis=0, keepdims=True)                     # [1, T]
    var = jnp.mean((x - mean) ** 2, axis=0, keepdims=True)
    xn = (x - mean) * jax.lax.rsqrt(var + eps)
    xn = xn * gamma_ref[...] + beta_ref[...]                      # [C, T]

    # ---- fused in_proj: one [2*d_inner, C] @ [C, T] matmul (256-lane out) ----
    proj = jnp.dot(w_in_ref[...], xn.astype(jnp.bfloat16),
                   preferred_element_type=jnp.float32) + b_in_ref[...]
    u = proj[:d_inner] * jax.nn.sigmoid(proj[d_inner:])           # [d_inner, T]

    # ---- causal depthwise conv along token (lane) axis, halo across groups --
    @pl.when(j == 0)
    def _reset_halo():                        # causal zero left padding
        halo_ref[...] = jnp.zeros_like(halo_ref)

    prev = halo_ref[...]                      # previous group's gated u
    wc = wconv_ref[...]                       # [d_inner, d_conv] (read once)
    col = jax.lax.broadcasted_iota(jnp.int32, (1, T), 1)
    conv = u * wc[:, d_conv - 1:d_conv]       # delay-0 tap
    for dly in range(1, d_conv):              # static unroll; shifts on XLU
        k = d_conv - 1 - dly
        shifted = jnp.where(col >= dly,
                            pltpu.roll(u, shift=dly, axis=1),
                            pltpu.roll(prev, shift=dly, axis=1))
        conv = conv + shifted * wc[:, k:k + 1]
    halo_ref[...] = u                         # carry tail for next group

    # ---- chunk-local scan: block-diagonal Toeplitz matmul, 256-lane RHS ------
    y = jnp.dot(conv.astype(jnp.bfloat16), kbd_ref[...],
                preferred_element_type=jnp.float32)               # [d_inner, T]

    # ---- out_proj + D * residual; lane-dense [C, T] store --------------------
    out = jnp.dot(w_out_ref[...], y.astype(jnp.bfloat16),
                  preferred_element_type=jnp.float32) + b_out_ref[...]
    o_ref[0] = out + dvec_ref[...] * x


# ----------------------------------------------------------------------------
# Wrapper glue
# ----------------------------------------------------------------------------
def dynamic_chunk_size(H, W):
    seq_len = H * W
    if seq_len <= 4096:
        return 64
    elif seq_len <= 16384:
        return 128
    return 256


def build_group_scan_matrix(A, Bp, Cp, chunk, T):
    """Block-diagonal stack of the per-chunk Toeplitz scan tile, [T, T].

    Kbd[k, t] = g(t - k) if (k, t) in the same chunk and t >= k else 0,
    with g(d) = sum_s a_s^d * B_s * C_s and a = exp(-exp(A)).
    y^T = conv^T @ Kbd (tokens on lanes).
    """
    d_state = A.shape[-1]
    a = jnp.exp(-jnp.exp(A.reshape(d_state)))
    bc = Bp.reshape(d_state) * Cp.reshape(d_state)
    d = jnp.arange(chunk)
    g = jnp.sum((a[None, :] ** d[:, None]) * bc[None, :], axis=-1)   # [chunk]
    k_idx = jnp.arange(T)[:, None]
    t_idx = jnp.arange(T)[None, :]
    diff = t_idx - k_idx
    valid = (diff >= 0) & ((t_idx // chunk) == (k_idx // chunk))
    Kbd = jnp.where(valid, g[jnp.clip(diff, 0, chunk - 1)], 0.0)
    return Kbd.astype(jnp.float32)


def mamba_forward(x, params, H, W):
    B, N, C = x.shape
    w_in = params["w_in"]
    d_inner = w_in.shape[1] // 2
    d_conv = params["w_conv"].shape[0]

    chunk = dynamic_chunk_size(H, W)
    G = max(1, 256 // chunk)                  # group G chunks -> 256 token lanes
    T = G * chunk
    num_groups = (N + T - 1) // T
    Npad = num_groups * T
    x_in = jnp.pad(x, ((0, 0), (0, Npad - N), (0, 0))) if Npad != N else x
    x_t = jnp.transpose(x_in, (0, 2, 1))      # [B, C, Npad], tokens on lanes

    # Kc bf16 carries ~0.4% relative error near the diagonal; fine for inference
    # tolerance here, keep f32 if this ever feeds training.
    kbd_bf = build_group_scan_matrix(params["A"], params["Bp"], params["Cp"],
                                     chunk, T).astype(jnp.bfloat16)

    # Transposed parameters; matmul operands in bf16 (f32 accumulation in-kernel).
    w_in_t = w_in.T.astype(jnp.bfloat16)                       # [2*d_inner, C]
    b_in_t = params["b_in"].reshape(2 * d_inner, 1)            # [2*d_inner, 1]
    w_conv_t = params["w_conv"].T                              # [d_inner, d_conv]
    w_out_t = params["w_out"].T.astype(jnp.bfloat16)           # [C, d_inner]
    b_out_t = params["b_out"].reshape(C, 1)
    gamma_t = params["gamma"].reshape(C, 1)
    beta_t = params["beta"].reshape(C, 1)
    dvec_t = params["Dvec"].reshape(C, 1)

    kern = functools.partial(mamba_kernel, d_conv=d_conv, d_inner=d_inner,
                             eps=1e-5)

    flops = int(B * Npad * (8 * C + 4 * C * d_inner + 4 * d_inner
                            + 2 * d_conv * d_inner + 2 * d_inner * T
                            + 2 * d_inner * C + 2 * C))
    transcendentals = int(B * Npad * (d_inner + 1))
    bytes_accessed = int(4 * 2 * B * Npad * C
                         + 2 * (2 * C * d_inner + T * T + d_inner * C)
                         + 4 * (d_conv * d_inner + 2 * d_inner + 6 * C))
    cost = pl.CostEstimate(flops=flops, transcendentals=transcendentals,
                           bytes_accessed=bytes_accessed)

    out_t = pl.pallas_call(
        kern,
        out_shape=jax.ShapeDtypeStruct((B, C, Npad), jnp.float32),
        grid=(B, num_groups),
        in_specs=[
            pl.BlockSpec((1, C, T), lambda b, j: (b, 0, j)),          # x^T
            pl.BlockSpec((C, 1), lambda b, j: (0, 0)),                # ln gamma
            pl.BlockSpec((C, 1), lambda b, j: (0, 0)),                # ln beta
            pl.BlockSpec((2 * d_inner, C), lambda b, j: (0, 0)),      # in_proj W^T (bf16)
            pl.BlockSpec((2 * d_inner, 1), lambda b, j: (0, 0)),      # in_proj b^T
            pl.BlockSpec((d_inner, d_conv), lambda b, j: (0, 0)),     # depthwise conv taps
            pl.BlockSpec((T, T), lambda b, j: (0, 0)),                # Kbd (bf16)
            pl.BlockSpec((C, d_inner), lambda b, j: (0, 0)),          # out_proj W^T (bf16)
            pl.BlockSpec((C, 1), lambda b, j: (0, 0)),                # out_proj b^T
            pl.BlockSpec((C, 1), lambda b, j: (0, 0)),                # D
        ],
        out_specs=pl.BlockSpec((1, C, T), lambda b, j: (b, 0, j)),
        scratch_shapes=[pltpu.VMEM((d_inner, T), jnp.float32)],       # conv halo carry
        compiler_params=pltpu.CompilerParams(
            dimension_semantics=("parallel", "arbitrary"),
            vmem_limit_bytes=32 * 1024 * 1024,
        ),
        cost_estimate=cost,
    )(x_t, gamma_t, beta_t, w_in_t, b_in_t, w_conv_t, kbd_bf, w_out_t,
      b_out_t, dvec_t)

    return jnp.transpose(out_t, (0, 2, 1))[:, :N, :]


# ----------------------------------------------------------------------------
# Pure-JAX reference (literal chunked recurrence) for correctness check
# ----------------------------------------------------------------------------
def mamba_reference(x, params, H, W):
    B, N, C = x.shape
    w_in = params["w_in"]
    d_inner = w_in.shape[1] // 2
    d_conv = params["w_conv"].shape[0]
    d_state = params["A"].shape[-1]

    mean = x.mean(-1, keepdims=True)
    var = ((x - mean) ** 2).mean(-1, keepdims=True)
    xn = (x - mean) / jnp.sqrt(var + 1e-5) * params["gamma"] + params["beta"]
    proj = xn @ w_in + params["b_in"]
    u, gate = proj[..., :d_inner], proj[..., d_inner:]
    u = u * jax.nn.sigmoid(gate)

    up = jnp.pad(u, ((0, 0), (d_conv - 1, 0), (0, 0)))
    conv = sum(params["w_conv"][k] * up[:, k:k + N, :] for k in range(d_conv))

    chunk = dynamic_chunk_size(H, W)
    num_chunks = (N + chunk - 1) // chunk
    pad_len = num_chunks * chunk - N
    xc = jnp.pad(conv, ((0, 0), (0, pad_len), (0, 0)))
    xc = xc.reshape(B, num_chunks, chunk, d_inner)

    a = jnp.exp(-jnp.exp(params["A"].reshape(d_state)))
    Bv = params["Bp"].reshape(d_state)
    Cv = params["Cp"].reshape(d_state)

    def step(h, x_t):
        h = a * h + x_t[..., None] * Bv
        return h, jnp.sum(h * Cv, axis=-1)

    h0 = jnp.zeros((B, num_chunks, d_inner, d_state), jnp.float32)
    _, ys = jax.lax.scan(step, h0, jnp.moveaxis(xc, 2, 0))
    y = jnp.moveaxis(ys, 0, 2).reshape(B, num_chunks * chunk, d_inner)[:, :N]

    out = y @ params["w_out"] + params["b_out"]
    return out + params["Dvec"] * x


# ----------------------------------------------------------------------------
if __name__ == "__main__":
    # module config: dim=32, d_state=16, d_conv=4, expand=2 -> d_inner=64
    dim, d_state, d_conv, expand = 32, 16, 4, 2
    d_inner = expand * dim
    B, H, W = 2, 16, 16
    N = H * W                                   # 256 tokens -> 1 group of 4 chunks

    key = jax.random.PRNGKey(0)
    ks = jax.random.split(key, 12)

    params = {
        "A":      jax.random.uniform(ks[0], (1, 1, d_state), jnp.float32, -1.0, -0.1),
        "Bp":     jax.random.normal(ks[1], (1, 1, d_state), jnp.float32),
        "Cp":     jax.random.normal(ks[2], (1, 1, d_state), jnp.float32),
        "Dvec":   jnp.ones((1, dim), jnp.float32),
        "w_conv": 0.1 * jax.random.normal(ks[3], (d_conv, d_inner), jnp.float32),
        "w_in":   0.1 * jax.random.normal(ks[4], (dim, 2 * d_inner), jnp.float32),
        "b_in":   0.1 * jax.random.normal(ks[5], (1, 2 * d_inner), jnp.float32),
        "w_out":  0.1 * jax.random.normal(ks[6], (d_inner, dim), jnp.float32),
        "b_out":  0.1 * jax.random.normal(ks[7], (1, dim), jnp.float32),
        "gamma":  1.0 + 0.1 * jax.random.normal(ks[8], (1, dim), jnp.float32),
        "beta":   0.1 * jax.random.normal(ks[9], (1, dim), jnp.float32),
    }

    x = jax.random.normal(ks[10], (B, N, dim), jnp.float32)

    out = jax.block_until_ready(mamba_forward(x, params, H, W))
    ref = jax.block_until_ready(mamba_reference(x, params, H, W))

    # bf16 matmul operands with f32 accumulation -> loosened tolerance.
    np.testing.assert_allclose(np.asarray(out), np.asarray(ref), rtol=2e-2, atol=2e-2)

    print("KERNEL_OK")
</pallas_src>

<mosaic_0001>
module attributes {stable_mosaic.version = 11 : i64} {
  func.func @mamba_kernel(%arg0: i32, %arg1: i32, %arg2: memref<1x32x256xf32, #tpu.memory_space<vmem>>, %arg3: memref<32x1xf32, #tpu.memory_space<vmem>>, %arg4: memref<32x1xf32, #tpu.memory_space<vmem>>, %arg5: memref<128x32xbf16, #tpu.memory_space<vmem>>, %arg6: memref<128x1xf32, #tpu.memory_space<vmem>>, %arg7: memref<64x4xf32, #tpu.memory_space<vmem>>, %arg8: memref<256x256xbf16, #tpu.memory_space<vmem>>, %arg9: memref<32x64xbf16, #tpu.memory_space<vmem>>, %arg10: memref<32x1xf32, #tpu.memory_space<vmem>>, %arg11: memref<32x1xf32, #tpu.memory_space<vmem>>, %arg12: memref<1x32x256xf32, #tpu.memory_space<vmem>>, %arg13: memref<64x256xf32, #tpu.memory_space<vmem>>) attributes {dimension_semantics = [#tpu.dimension_semantics<parallel>, #tpu.dimension_semantics<arbitrary>], iteration_bounds = array<i64: 2, 1>, scalar_prefetch = 0 : i64, scratch_operands = 1 : i64, tpu.core_type = #tpu.core_type<tc>, window_params = [{transform_indices = @transform_0, window_bounds = array<i64: 1, 32, 256>}, {pipeline_mode = #tpu.pipeline_mode<synchronous>, transform_indices = @transform_1, window_bounds = array<i64: 32, 1>}, {pipeline_mode = #tpu.pipeline_mode<synchronous>, transform_indices = @transform_2, window_bounds = array<i64: 32, 1>}, {pipeline_mode = #tpu.pipeline_mode<synchronous>, transform_indices = @transform_3, window_bounds = array<i64: 128, 32>}, {pipeline_mode = #tpu.pipeline_mode<synchronous>, transform_indices = @transform_4, window_bounds = array<i64: 128, 1>}, {pipeline_mode = #tpu.pipeline_mode<synchronous>, transform_indices = @transform_5, window_bounds = array<i64: 64, 4>}, {pipeline_mode = #tpu.pipeline_mode<synchronous>, transform_indices = @transform_6, window_bounds = array<i64: 256, 256>}, {pipeline_mode = #tpu.pipeline_mode<synchronous>, transform_indices = @transform_7, window_bounds = array<i64: 32, 64>}, {pipeline_mode = #tpu.pipeline_mode<synchronous>, transform_indices = @transform_8, window_bounds = array<i64: 32, 1>}, {pipeline_mode = #tpu.pipeline_mode<synchronous>, transform_indices = @transform_9, window_bounds = array<i64: 32, 1>}, {transform_indices = @transform_10, window_bounds = array<i64: 1, 32, 256>}]} {
    %c0 = arith.constant 0 : index
    %c0_0 = arith.constant 0 : index
    %c0_1 = arith.constant 0 : index
    %0 = vector.load %arg2[%c0, %c0_0, %c0_1] : memref<1x32x256xf32, #tpu.memory_space<vmem>>, vector<1x32x256xf32>
    %1 = vector.shape_cast %0 : vector<1x32x256xf32> to vector<32x256xf32>
    %cst = arith.constant dense<0.000000e+00> : vector<256xf32>
    %2 = vector.multi_reduction <add>, %1, %cst [0] : vector<32x256xf32> to vector<256xf32>
    %3 = vector.shape_cast %2 : vector<256xf32> to vector<1x256xf32>
    %cst_2 = arith.constant 3.200000e+01 : f32
    %4 = vector.broadcast %cst_2 : f32 to vector<1x256xf32>
    %5 = arith.divf %3, %4 : vector<1x256xf32>
    %6 = vector.broadcast %5 : vector<1x256xf32> to vector<32x256xf32>
    %7 = arith.subf %1, %6 : vector<32x256xf32>
    %8 = arith.mulf %7, %7 : vector<32x256xf32>
    %cst_3 = arith.constant dense<0.000000e+00> : vector<256xf32>
    %9 = vector.multi_reduction <add>, %8, %cst_3 [0] : vector<32x256xf32> to vector<256xf32>
    %10 = vector.shape_cast %9 : vector<256xf32> to vector<1x256xf32>
    %cst_4 = arith.constant 3.200000e+01 : f32
    %11 = vector.broadcast %cst_4 : f32 to vector<1x256xf32>
    %12 = arith.divf %10, %11 : vector<1x256xf32>
    %13 = vector.broadcast %5 : vector<1x256xf32> to vector<32x256xf32>
    %14 = arith.subf %1, %13 : vector<32x256xf32>
    %cst_5 = arith.constant 9.99999974E-6 : f32
    %15 = vector.broadcast %cst_5 : f32 to vector<1x256xf32>
    %16 = arith.addf %12, %15 : vector<1x256xf32>
    %17 = math.rsqrt %16 : vector<1x256xf32>
    %18 = vector.broadcast %17 : vector<1x256xf32> to vector<32x256xf32>
    %19 = arith.mulf %14, %18 : vector<32x256xf32>
    %c0_6 = arith.constant 0 : index
    %c0_7 = arith.constant 0 : index
    %20 = vector.load %arg3[%c0_6, %c0_7] : memref<32x1xf32, #tpu.memory_space<vmem>>, vector<32x1xf32>
    %21 = vector.broadcast %20 : vector<32x1xf32> to vector<32x256xf32>
    %22 = arith.mulf %19, %21 : vector<32x256xf32>
    %c0_8 = arith.constant 0 : index
    %c0_9 = arith.constant 0 : index
    %23 = vector.load %arg4[%c0_8, %c0_9] : memref<32x1xf32, #tpu.memory_space<vmem>>, vector<32x1xf32>
    %24 = vector.broadcast %23 : vector<32x1xf32> to vector<32x256xf32>
    %25 = arith.addf %22, %24 : vector<32x256xf32>
    %c0_10 = arith.constant 0 : index
    %c0_11 = arith.constant 0 : index
    %26 = vector.load %arg5[%c0_10, %c0_11] : memref<128x32xbf16, #tpu.memory_space<vmem>>, vector<128x32xbf16>
    %27 = arith.truncf %25 : vector<32x256xf32> to vector<32x256xbf16>
    %cst_12 = arith.constant dense<0.000000e+00> : vector<128x256xf32>
    %28 = tpu.matmul %26, %27, %cst_12 {dimension_numbers = #tpu.dot_dimension_numbers<[1], [0], [0], [1], [0, 0, 1, 1], [], []>} : vector<128x32xbf16>, vector<32x256xbf16>, vector<128x256xf32> -> vector<128x256xf32>
    %c0_13 = arith.constant 0 : index
    %c0_14 = arith.constant 0 : index
    %29 = vector.load %arg6[%c0_13, %c0_14] : memref<128x1xf32, #tpu.memory_space<vmem>>, vector<128x1xf32>
    %30 = vector.broadcast %29 : vector<128x1xf32> to vector<128x256xf32>
    %31 = arith.addf %28, %30 : vector<128x256xf32>
    %32 = vector.extract_strided_slice %31 {offsets = [0, 0], sizes = [64, 256], strides = [1, 1]} : vector<128x256xf32> to vector<64x256xf32>
    %33 = vector.extract_strided_slice %31 {offsets = [64, 0], sizes = [64, 256], strides = [1, 1]} : vector<128x256xf32> to vector<64x256xf32>
    %34 = arith.negf %33 : vector<64x256xf32>
    %35 = math.exp %34 : vector<64x256xf32>
    %cst_15 = arith.constant 1.000000e+00 : f32
    %36 = vector.broadcast %cst_15 : f32 to vector<64x256xf32>
    %37 = arith.addf %36, %35 : vector<64x256xf32>
    %38 = arith.divf %36, %37 : vector<64x256xf32>
    %39 = arith.mulf %32, %38 : vector<64x256xf32>
    %c0_i32 = arith.constant 0 : i32
    %40 = arith.cmpi eq, %arg1, %c0_i32 : i32
    %41 = arith.extui %40 : i1 to i32
    %c0_i32_16 = arith.constant 0 : i32
    %42 = arith.cmpi ne, %41, %c0_i32_16 : i32
    scf.if %42 {
      %cst_42 = arith.constant 0.000000e+00 : f32
      %99 = vector.broadcast %cst_42 : f32 to vector<64x256xf32>
      %c0_43 = arith.constant 0 : index
      %c0_44 = arith.constant 0 : index
      %100 = vector.load %arg13[%c0_43, %c0_44] : memref<64x256xf32, #tpu.memory_space<vmem>>, vector<64x256xf32>
      tpu.vector_store %arg13[%c0_43, %c0_44], %99 {strides = array<i32>} : memref<64x256xf32, #tpu.memory_space<vmem>>, vector<64x256xf32>,
    } else {
    }
    %c0_17 = arith.constant 0 : index
    %c0_18 = arith.constant 0 : index
    %43 = vector.load %arg13[%c0_17, %c0_18] : memref<64x256xf32, #tpu.memory_space<vmem>>, vector<64x256xf32>
    %c0_19 = arith.constant 0 : index
    %c0_20 = arith.constant 0 : index
    %44 = vector.load %arg7[%c0_19, %c0_20] : memref<64x4xf32, #tpu.memory_space<vmem>>, vector<64x4xf32>
    %45 = tpu.iota {dimensions = array<i32: 1>} : vector<1x256xi32>
    %46 = vector.extract_strided_slice %44 {offsets = [0, 3], sizes = [64, 1], strides = [1, 1]} : vector<64x4xf32> to vector<64x1xf32>
    %47 = vector.broadcast %46 : vector<64x1xf32> to vector<64x256xf32>
    %48 = arith.mulf %39, %47 : vector<64x256xf32>
    %c1_i32 = arith.constant 1 : i32
    %49 = vector.broadcast %c1_i32 : i32 to vector<1x256xi32>
    %50 = arith.cmpi sge, %45, %49 : vector<1x256xi32>
    %c1_i32_21 = arith.constant 1 : i32
    %51 = tpu.dynamic_rotate %39 by %c1_i32_21 dim 1 : vector<64x256xf32>, i32 -> vector<64x256xf32>
    %c1_i32_22 = arith.constant 1 : i32
    %52 = tpu.dynamic_rotate %43 by %c1_i32_22 dim 1 : vector<64x256xf32>, i32 -> vector<64x256xf32>
    %53 = vector.shape_cast %50 : vector<1x256xi1> to vector<1x256xi1>
    %54 = vector.broadcast %53 : vector<1x256xi1> to vector<64x256xi1>
    %55 = arith.select %54, %51, %52 : vector<64x256xi1>, vector<64x256xf32>
    %56 = vector.extract_strided_slice %44 {offsets = [0, 2], sizes = [64, 1], strides = [1, 1]} : vector<64x4xf32> to vector<64x1xf32>
    %57 = vector.broadcast %56 : vector<64x1xf32> to vector<64x256xf32>
    %58 = arith.mulf %55, %57 : vector<64x256xf32>
    %59 = arith.addf %48, %58 : vector<64x256xf32>
    %c2_i32 = arith.constant 2 : i32
    %60 = vector.broadcast %c2_i32 : i32 to vector<1x256xi32>
    %61 = arith.cmpi sge, %45, %60 : vector<1x256xi32>
    %c2_i32_23 = arith.constant 2 : i32
    %62 = tpu.dynamic_rotate %39 by %c2_i32_23 dim 1 : vector<64x256xf32>, i32 -> vector<64x256xf32>
    %c2_i32_24 = arith.constant 2 : i32
    %63 = tpu.dynamic_rotate %43 by %c2_i32_24 dim 1 : vector<64x256xf32>, i32 -> vector<64x256xf32>
    %64 = vector.shape_cast %61 : vector<1x256xi1> to vector<1x256xi1>
    %65 = vector.broadcast %64 : vector<1x256xi1> to vector<64x256xi1>
    %66 = arith.select %65, %62, %63 : vector<64x256xi1>, vector<64x256xf32>
    %67 = vector.extract_strided_slice %44 {offsets = [0, 1], sizes = [64, 1], strides = [1, 1]} : vector<64x4xf32> to vector<64x1xf32>
    %68 = vector.broadcast %67 : vector<64x1xf32> to vector<64x256xf32>
    %69 = arith.mulf %66, %68 : vector<64x256xf32>
    %70 = arith.addf %59, %69 : vector<64x256xf32>
    %c3_i32 = arith.constant 3 : i32
    %71 = vector.broadcast %c3_i32 : i32 to vector<1x256xi32>
    %72 = arith.cmpi sge, %45, %71 : vector<1x256xi32>
    %c3_i32_25 = arith.constant 3 : i32
    %73 = tpu.dynamic_rotate %39 by %c3_i32_25 dim 1 : vector<64x256xf32>, i32 -> vector<64x256xf32>
    %c3_i32_26 = arith.constant 3 : i32
    %74 = tpu.dynamic_rotate %43 by %c3_i32_26 dim 1 : vector<64x256xf32>, i32 -> vector<64x256xf32>
    %75 = vector.shape_cast %72 : vector<1x256xi1> to vector<1x256xi1>
    %76 = vector.broadcast %75 : vector<1x256xi1> to vector<64x256xi1>
    %77 = arith.select %76, %73, %74 : vector<64x256xi1>, vector<64x256xf32>
    %78 = vector.extract_strided_slice %44 {offsets = [0, 0], sizes = [64, 1], strides = [1, 1]} : vector<64x4xf32> to vector<64x1xf32>
    %79 = vector.broadcast %78 : vector<64x1xf32> to vector<64x256xf32>
    %80 = arith.mulf %77, %79 : vector<64x256xf32>
    %81 = arith.addf %70, %80 : vector<64x256xf32>
    %c0_27 = arith.constant 0 : index
    %c0_28 = arith.constant 0 : index
    %82 = vector.load %arg13[%c0_27, %c0_28] : memref<64x256xf32, #tpu.memory_space<vmem>>, vector<64x256xf32>
    tpu.vector_store %arg13[%c0_27, %c0_28], %39 {strides = array<i32>} : memref<64x256xf32, #tpu.memory_space<vmem>>, vector<64x256xf32>,
    %83 = arith.truncf %81 : vector<64x256xf32> to vector<64x256xbf16>
    %c0_29 = arith.constant 0 : index
    %c0_30 = arith.constant 0 : index
    %84 = vector.load %arg8[%c0_29, %c0_30] : memref<256x256xbf16, #tpu.memory_space<vmem>>, vector<256x256xbf16>
    %cst_31 = arith.constant dense<0.000000e+00> : vector<64x256xf32>
    %85 = tpu.matmul %83, %84, %cst_31 {dimension_numbers = #tpu.dot_dimension_numbers<[1], [0], [0], [1], [0, 0, 1, 1], [], []>} : vector<64x256xbf16>, vector<256x256xbf16>, vector<64x256xf32> -> vector<64x256xf32>
    %c0_32 = arith.constant 0 : index
    %c0_33 = arith.constant 0 : index
    %86 = vector.load %arg9[%c0_32, %c0_33] : memref<32x64xbf16, #tpu.memory_space<vmem>>, vector<32x64xbf16>
    %87 = arith.truncf %85 : vector<64x256xf32> to vector<64x256xbf16>
    %cst_34 = arith.constant dense<0.000000e+00> : vector<32x256xf32>
    %88 = tpu.matmul %86, %87, %cst_34 {dimension_numbers = #tpu.dot_dimension_numbers<[1], [0], [0], [1], [0, 0, 1, 1], [], []>} : vector<32x64xbf16>, vector<64x256xbf16>, vector<32x256xf32> -> vector<32x256xf32>
    %c0_35 = arith.constant 0 : index
    %c0_36 = arith.constant 0 : index
    %89 = vector.load %arg10[%c0_35, %c0_36] : memref<32x1xf32, #tpu.memory_space<vmem>>, vector<32x1xf32>
    %90 = vector.broadcast %89 : vector<32x1xf32> to vector<32x256xf32>
    %91 = arith.addf %88, %90 : vector<32x256xf32>
    %c0_37 = arith.constant 0 : index
    %c0_38 = arith.constant 0 : index
    %92 = vector.load %arg11[%c0_37, %c0_38] : memref<32x1xf32, #tpu.memory_space<vmem>>, vector<32x1xf32>
    %93 = vector.broadcast %92 : vector<32x1xf32> to vector<32x256xf32>
    %94 = arith.mulf %93, %1 : vector<32x256xf32>
    %95 = arith.addf %91, %94 : vector<32x256xf32>
    %c0_39 = arith.constant 0 : index
    %c0_40 = arith.constant 0 : index
    %c0_41 = arith.constant 0 : index
    %96 = vector.load %arg12[%c0_39, %c0_40, %c0_41] : memref<1x32x256xf32, #tpu.memory_space<vmem>>, vector<1x32x256xf32>
    %97 = vector.shape_cast %96 : vector<1x32x256xf32> to vector<32x256xf32>
    %98 = vector.shape_cast %95 : vector<32x256xf32> to vector<1x32x256xf32>
    tpu.vector_store %arg12[%c0_39, %c0_40, %c0_41], %98 {strides = array<i32>} : memref<1x32x256xf32, #tpu.memory_space<vmem>>, vector<1x32x256xf32>,
    return
  }
  func.func @transform_0(%arg0: i32, %arg1: i32) -> (i32, i32, i32) {
    %c0_i32 = arith.constant 0 : i32
    %c0_i32_0 = arith.constant 0 : i32
    return %arg0, %c0_i32, %arg1 : i32, i32, i32
  }
  func.func @transform_1(%arg0: i32, %arg1: i32) -> (i32, i32) {
    %c0_i32 = arith.constant 0 : i32
    %c0_i32_0 = arith.constant 0 : i32
    %c0_i32_1 = arith.constant 0 : i32
    return %c0_i32, %c0_i32_0 : i32, i32
  }
  func.func @transform_2(%arg0: i32, %arg1: i32) -> (i32, i32) {
    %c0_i32 = arith.constant 0 : i32
    %c0_i32_0 = arith.constant 0 : i32
    %c0_i32_1 = arith.constant 0 : i32
    return %c0_i32, %c0_i32_0 : i32, i32
  }
  func.func @transform_3(%arg0: i32, %arg1: i32) -> (i32, i32) {
    %c0_i32 = arith.constant 0 : i32
    %c0_i32_0 = arith.constant 0 : i32
    %c0_i32_1 = arith.constant 0 : i32
    return %c0_i32, %c0_i32_0 : i32, i32
  }
  func.func @transform_4(%arg0: i32, %arg1: i32) -> (i32, i32) {
    %c0_i32 = arith.constant 0 : i32
    %c0_i32_0 = arith.constant 0 : i32
    %c0_i32_1 = arith.constant 0 : i32
    return %c0_i32, %c0_i32_0 : i32, i32
  }
  func.func @transform_5(%arg0: i32, %arg1: i32) -> (i32, i32) {
    %c0_i32 = arith.constant 0 : i32
    %c0_i32_0 = arith.constant 0 : i32
    %c0_i32_1 = arith.constant 0 : i32
    return %c0_i32, %c0_i32_0 : i32, i32
  }
  func.func @transform_6(%arg0: i32, %arg1: i32) -> (i32, i32) {
    %c0_i32 = arith.constant 0 : i32
    %c0_i32_0 = arith.constant 0 : i32
    %c0_i32_1 = arith.constant 0 : i32
    return %c0_i32, %c0_i32_0 : i32, i32
  }
  func.func @transform_7(%arg0: i32, %arg1: i32) -> (i32, i32) {
    %c0_i32 = arith.constant 0 : i32
    %c0_i32_0 = arith.constant 0 : i32
    %c0_i32_1 = arith.constant 0 : i32
    return %c0_i32, %c0_i32_0 : i32, i32
  }
  func.func @transform_8(%arg0: i32, %arg1: i32) -> (i32, i32) {
    %c0_i32 = arith.constant 0 : i32
    %c0_i32_0 = arith.constant 0 : i32
    %c0_i32_1 = arith.constant 0 : i32
    return %c0_i32, %c0_i32_0 : i32, i32
  }
  func.func @transform_9(%arg0: i32, %arg1: i32) -> (i32, i32) {
    %c0_i32 = arith.constant 0 : i32
    %c0_i32_0 = arith.constant 0 : i32
    %c0_i32_1 = arith.constant 0 : i32
    return %c0_i32, %c0_i32_0 : i32, i32
  }
  func.func @transform_10(%arg0: i32, %arg1: i32) -> (i32, i32, i32) {
    %c0_i32 = arith.constant 0 : i32
    %c0_i32_0 = arith.constant 0 : i32
    return %arg0, %c0_i32, %arg1 : i32, i32, i32
  }
}

</mosaic_0001>

<bundles_post_ra>
// kernel: tpu_custom_call.1
= control target key start
LH: loop header
LB: loop body
LE: loop exit
PB: predicated region body
PF: predicated region fallthrough
CT: control target
= control target key end

     0   :  { %15 = vsyncpa [#allocation4], 0  ;;  %s3963_s0 = inlined_call_operand.vmem [shape: f32[2,32,256], index: 0, kind: input, shape index: {}]   ;;  %s3964_s1 = inlined_call_operand.vmem [shape: f32[32,1], index: 1, kind: input, shape index: {}]   ;;  %s3965_s2 = inlined_call_operand.vmem [shape: f32[32,1], index: 2, kind: input, shape index: {}]   ;;  %s3966_s3 = inlined_call_operand.vmem [shape: bf16[128,32], index: 3, kind: input, shape index: {}]   ;;  %s3967_s4 = inlined_call_operand.vmem [shape: f32[128,1], index: 4, kind: input, shape index: {}]   ;;  %s3968_s5 = inlined_call_operand.vmem [shape: f32[64,4], index: 5, kind: input, shape index: {}]   ;;  %s3969_s6 = inlined_call_operand.vmem [shape: bf16[256,256], index: 6, kind: input, shape index: {}]   ;;  %s3970_s7 = inlined_call_operand.vmem [shape: bf16[32,64], index: 7, kind: input, shape index: {}]   ;;  %s3971_s8 = inlined_call_operand.vmem [shape: f32[32,1], index: 8, kind: input, shape index: {}]   ;;  %s3972_s9 = inlined_call_operand.vmem [shape: f32[32,1], index: 9, kind: input, shape index: {}]   ;;  %s3973_s10 = inlined_call_operand.hbm [shape: f32[2,32,256], index: 10, kind: output, shape index: {}]  }
   0x1   :  { %17 = vsyncpa [#allocation4 + $0x1], 0  ;;  %s2697_s13 = smov 0   ;;  %s2699_s14 = smov 0  }
   0x2   :  { %s2701_s15 = smov 0   ;;  %s2703_s16 = smov 0  }
   0x3   :  { %s2705_s17 = smov 0   ;;  %s2707_s18 = smov 0  }
   0x4 LB: > { %4007 = sst [smem:[#allocation6_spill]] %s2625_s17  ;;  %s2127_s19 = sadd.s32 4294967295, %s2629_s18   ;;  %s2629_s18 = sphi %s2707_s18, %s23_s18   ;;  %s2625_s17 = sphi %s2705_s17, %s4082_s17   ;;  %s2621_s16 = sphi %s2703_s16, %s4081_s16   ;;  %s2617_s15 = sphi %s2701_s15, %s4085_s15   ;;  %s2613_s14 = sphi %s2699_s14, %s4084_s14   ;;  %s2609_s13 = sphi %s2697_s13, %s4083_s13  }
   0x5   : > { %s2128_s20 = sadd.s32 4294967294, %s2629_s18   ;;  %s35_s21 = sadd.s32 1, %s2625_s17 }
   0x6   : > { %s261_s22 = sadd.s32 1, %s2617_s15  ;;  %p37_p0 = scmp.ge.s32.totalorder %s35_s21, 2 }
   0x7   : > { %p271_p1 = scmp.ne.s32.totalorder %s2617_s15, %s2613_s14  ;;  %p272_p2 = scmp.eq.s32.totalorder %s2127_s19, 1 }
   0x8   : > { %p277_p3 = scmp.ne.s32.totalorder %s2613_s14, %s2609_s13  ;;  %s4087_s21 = smov (%p37_p0, %s35_s21), 0 }
   0x9   : > { %4008 = sst [smem:[#allocation7_spill]] %s4087_s21  ;;  %p2737_p4 = por %p272_p2, %p271_p1 }
   0xa   : > { %p278_p5 = scmp.eq.s32.totalorder %s2128_s20, 1  ;;  %s256_s24 = ssub.s32 %s2625_s17, %s4087_s21 }
   0xb   : > { %p2131_p6 = scmp.ge.s32.totalorder %s2629_s18, 1  ;;  %p259_p7 = scmp.eq.s32.totalorder %s256_s24, 0 }
   0xc   : > { %p2744_p8 = por %p278_p5, %p277_p3  ;;  %p336_p9 = scmp.lt.s32.totalorder %s2629_s18, 3 }
   0xd   : > { %s2750_s26 = scalar_select %p259_p7, %s2617_s15, %s261_s22  }
   0xe   : > { %p337_p10 = pnand %p2131_p6, %p336_p9 }
  0x10   : > { %340 = sbr.rel (%p337_p10) target bundleno = 1151 (0x47f), region = 60 }
  0x17   : > { %v499_v0 = vld [vmem:[%s3965_s2] sm:$0xff]  ;;  %v3976_v2 = vmov 0   ;;  %p379_p11 = scmp.lt.s32.totalorder %s2621_s16, 1  ;;  %v500_v3 = vld [vmem:[%s3965_s2 + $0x8] sm:$0xff]  ;;  %v470_v5 = vld [vmem:[%s3964_s1 + $0x18] sm:$0xff]  ;;  %v2632_v14 = vmov 3  }
  0x18   : > { %v467_v1 = vld [vmem:[%s3964_s1] sm:$0xff]  ;;  %2276 = vset.pattern.permute.xlu1 %v3976_v2  ;;  %2275 = vset.pattern.permute.xlu0 %v3976_v2  ;;  %v468_v4 = vld [vmem:[%s3964_s1 + $0x8] sm:$0xff]  ;;  %v469_v6 = vld [vmem:[%s3964_s1 + $0x10] sm:$0xff]  ;;  %v3977_v21 = vmov 0.0   ;;  %s2636_s11 = smov 3   ;;  %v2637_v48 = vmov 2  }
  0x19   : > { %505 = vperm.xlu1 %2276, %v499_v0   ;;  %473 = vperm.xlu0 %2275, %v467_v1   ;;  %s380_s22 = scalar_select %p379_p11, %s2621_s16, 1  ;;  %v502_v7 = vld [vmem:[%s3965_s2 + $0x18] sm:$0xff]  ;;  %v501_v8 = vld [vmem:[%s3965_s2 + $0x10] sm:$0xff]  ;;  %v560_v9 = vld [vmem:[%s3967_s4 + $0x48] sm:$0xff]  ;;  %v2638_v53 = vmov 1   ;;  %vm687_vm0 = vcmask 261120  }
  0x1a   : > { %744 = vmatprep.mubr.bf16.mxu0 %v3976_v2  ;;  %v2792_v10 = vld [vmem:[%s3968_s5] sm:$0xff]  ;;  %v562_v11 = vld [vmem:[%s3967_s4 + $0x58] sm:$0xff]  ;;  %v564_v16 = vld [vmem:[%s3967_s4 + $0x68] sm:$0xff]  ;;  %vm1924_vm7 = vcmask 523264   ;;  %s375_s19 = sand.u32 1, %s2613_s14   ;;  %s2639_s17 = smov [#allocation3]  }
  0x1b   : > { %s2208_s20 = sshll.u32 %s380_s22, 6  ;;  %v2820_v19 = vld [vmem:[%s3968_s5 + $0x18] sm:$0xff]  ;;  %v552_v29 = vld [vmem:[%s3967_s4 + $0x8] sm:$0xff]  ;;  %s2635_s22 = smov 2   ;;  %v2863_v38 = vld [vmem:[%s3968_s5 + $0x20] sm:$0xff] }
  0x1c   : > { %s2787_s28 = scalar_lea.vmem %s3963_s0, %s2208_s20  ;;  %s2634_s20 = smov 1   ;;  %v566_v24 = vld [vmem:[%s3967_s4 + $0x78] sm:$0xff]  ;;  %v556_v35 = vld [vmem:[%s3967_s4 + $0x28] sm:$0xff]  ;;  %v2884_v50 = vld [vmem:[%s3968_s5 + $0x30] sm:$0xff] }
  0x1d   : > { %510 = vperm.xlu1 %2276, %v500_v3   ;;  %478 = vperm.xlu0 %2275, %v468_v4   ;;  %v2798_v12 = vld [vmem:[%s2787_s28] sm:$0xff]  ;;  %v2801_v13 = vld [vmem:[%s2787_s28 + $0x10] sm:$0xff]  ;;  %v2805_v15 = vld [vmem:[%s2787_s28 + $0x8] sm:$0xff]  ;;  %s2555_s21 = sshll.u32 %s2639_s17, 4  ;;  %s2556_s21 = int_to_ptr.vmem [resolvable:$false] %s2555_s21 }
  0x1e   : > { %v2812_v17 = vld [vmem:[%s2787_s28 + $0x18] sm:$0xff]  ;;  %v2815_v18 = vld [vmem:[%s2787_s28 + $0x20] sm:$0xff]  ;;  %v398_v20 = vadd.f32 %v2801_v13, %v2798_v12  ;;  %v2829_v23 = vld [vmem:[%s2787_s28 + $0x28] sm:$0xff]  ;;  %s2557_s12 = scalar_lea.vmem %s2556_s21, 2048 }
  0x1f   : > { %v407_v22 = vadd.f32 %v2812_v17, %v2805_v15  ;;  %v2837_v26 = vld [vmem:[%s2787_s28 + $0x30] sm:$0xff]  ;;  %v2841_v28 = vld [vmem:[%s2787_s28 + $0x38] sm:$0xff]  ;;  %v974_v43 = vld [vmem:[%s3968_s5 + $0x8] sm:$0xff] }
  0x20   : > { %v399_v25 = vadd.f32 %v398_v20, %v2815_v18  ;;  %v554_v32 = vld [vmem:[%s3967_s4 + $0x18] sm:$0xff]  ;;  %v2912_v61 = vld [vmem:[%s3968_s5 + $0x28] sm:$0xff] }
  0x21   : > { %488 = vperm.xlu1 %2276, %v470_v5   ;;  %483 = vperm.xlu0 %2275, %v469_v6   ;;  %v408_v27 = vadd.f32 %v407_v22, %v2829_v23  ;;  %v558_v39 = vld [vmem:[%s3967_s4 + $0x38] sm:$0xff] }
  0x22   : > { %v400_v30 = vadd.f32 %v399_v25, %v2837_v26  ;;  %v2926_v1 = vld [vmem:[%s3968_s5 + $0x38] sm:$0xff]  ;;  %v559_v25 = vld [vmem:[%s3967_s4 + $0x40] sm:$0xff] }
  0x23   : > { %v409_v31 = vadd.f32 %v408_v27, %v2841_v28 }
  0x24   : > { %v401_v33 = vrot.slane %v400_v30, 4 }
  0x25   : > { %520 = vperm.xlu1 %2276, %v502_v7   ;;  %515 = vperm.xlu0 %2275, %v501_v8   ;;  %v410_v34 = vrot.slane %v409_v31, 4 }
  0x26   : > { %v402_v36 = vadd.f32 %v401_v33, %v400_v30 }
  0x27   : > { %v411_v37 = vadd.f32 %v410_v34, %v409_v31  ;;  %v563_v31 = vld [vmem:[%s3967_s4 + $0x60] sm:$0xff]  ;;  %v565_v34 = vld [vmem:[%s3967_s4 + $0x70] sm:$0xff] }
  0x28   : > { %v403_v40 = vrot.slane %v402_v36, 2 }
  0x29   : > { %614 = vperm.xlu1 %2276, %v560_v9   ;;  %2277 = vset.pattern.permute.xlu0 %v2632_v14  ;;  %v412_v41 = vrot.slane %v411_v37, 2 }
  0x2a   : > { %986 = vperm.xlu0 %2277, %v2792_v10   ;;  %v404_v42 = vadd.f32 %v403_v40, %v402_v36 }
  0x2b   : > { %v413_v44 = vadd.f32 %v412_v41, %v411_v37  ;;  %v551_v37 = vld [vmem:[%s3967_s4] sm:$0xff]  ;;  %v553_v41 = vld [vmem:[%s3967_s4 + $0x10] sm:$0xff] }
  0x2c   : > { %v405_v45 = vrot.slane %v404_v42, 1 }
  0x2d   : > { %624 = vperm.xlu1 %2276, %v562_v11   ;;  %v414_v46 = vrot.slane %v413_v44, 1 }
  0x2e   : > { %2288 = vrot.lane.b32.xlu0 %v3977_v21, %s2634_s20  ;;  %v406_v47 = vadd.f32 %v405_v45, %v404_v42 }
  0x2f   : > { %v415_v49 = vadd.f32 %v414_v46, %v413_v44  ;;  %v557_v44 = vld [vmem:[%s3967_s4 + $0x30] sm:$0xff] }
  0x30   : > { %v417_v51 = vmul.f32 0.03125, %v406_v47 }
  0x31   : > { %634 = vperm.xlu1 %2276, %v564_v16   ;;  %v418_v52 = vmul.f32 0.03125, %v415_v49 }
  0x32   : > { %1001 = vperm.xlu0 %2277, %v2820_v19   ;;  %v2890_v54 = vsub.f32 %v2798_v12, %v417_v51  ;;  %v2893_v55 = vsub.f32 %v2801_v13, %v417_v51  ;;  %v2903_v58 = vsub.f32 %v2815_v18, %v417_v51  ;;  %v2929_v3 = vsub.f32 %v2837_v26, %v417_v51  ;;  %v975_v12 = vld [vmem:[%s3968_s5 + $0x10] sm:$0xff] }
  0x33   : > { %v2897_v56 = vsub.f32 %v2805_v15, %v418_v52  ;;  %v2900_v57 = vsub.f32 %v2812_v17, %v418_v52  ;;  %v2915_v62 = vsub.f32 %v2829_v23, %v418_v52  ;;  %v2934_v6 = vsub.f32 %v2841_v28, %v418_v52  ;;  %v561_v28 = vld [vmem:[%s3967_s4 + $0x50] sm:$0xff] }
  0x34   : > { %v427_v59 = vmul.f32 %v2890_v54, %v2890_v54  ;;  %v429_v60 = vmul.f32 %v2893_v55, %v2893_v55  ;;  %v431_v4 = vmul.f32 %v2903_v58, %v2903_v58  ;;  %v433_v9 = vmul.f32 %v2929_v3, %v2929_v3 }
  0x35   : > { %644 = vperm.xlu1 %2276, %v566_v24   ;;  %v428_v63 = vmul.f32 %v2897_v56, %v2897_v56  ;;  %v430_v0 = vmul.f32 %v2900_v57, %v2900_v57  ;;  %v432_v7 = vmul.f32 %v2915_v62, %v2915_v62  ;;  %v434_v13 = vmul.f32 %v2934_v6, %v2934_v6 }
  0x36   : > { %2295 = vrot.lane.b32.xlu0 %v3977_v21, %s2635_s22  ;;  %v435_v5 = vadd.f32 %v429_v60, %v427_v59 }
  0x37   : > { %v444_v8 = vadd.f32 %v430_v0, %v428_v63 }
  0x38   : > { %v436_v11 = vadd.f32 %v435_v5, %v431_v4 }
  0x39   : > { %574 = vperm.xlu1 %2276, %v552_v29   ;;  %v445_v15 = vadd.f32 %v444_v8, %v432_v7 }
  0x3a   : > { %2311 = vrot.lane.b32.xlu0 %v3977_v21, %s2636_s11  ;;  %v437_v16 = vadd.f32 %v436_v11, %v433_v9 }
  0x3b   : > { %v446_v17 = vadd.f32 %v445_v15, %v434_v13 }
  0x3c   : > { %v438_v18 = vrot.slane %v437_v16, 4 }
  0x3d   : > { %584 = vperm.xlu1 %2276, %v554_v32   ;;  %v447_v20 = vrot.slane %v446_v17, 4 }
  0x3e   : > { %2317 = vrot.lane.b32.xlu0 %v3977_v21, %s2634_s20  ;;  %v439_v22 = vadd.f32 %v438_v18, %v437_v16 }
  0x3f   : > { %v448_v23 = vadd.f32 %v447_v20, %v446_v17 }
  0x40   : > { %v440_v24 = vrot.slane %v439_v22, 2 }
  0x41   : > { %594 = vperm.xlu1 %2276, %v556_v35   ;;  %v449_v26 = vrot.slane %v448_v23, 2 }
  0x42   : > { %1006 = vperm.xlu0 %2277, %v2863_v38   ;;  %v441_v27 = vadd.f32 %v440_v24, %v439_v22 }
  0x43   : > { %v450_v29 = vadd.f32 %v449_v26, %v448_v23 }
  0x44   : > { %v442_v30 = vrot.slane %v441_v27, 1 }
  0x45   : > { %604 = vperm.xlu1 %2276, %v558_v39   ;;  %v451_v32 = vrot.slane %v450_v29, 1 }
  0x46   : > { %2329 = vrot.lane.b32.xlu0 %v3977_v21, %s2635_s22  ;;  %v443_v33 = vadd.f32 %v442_v30, %v441_v27  ;;  %v2418_v27 = vld [vmem:[%s3966_s3 + $0x8] sm:$0xff]  }
  0x47   : > { %v452_v35 = vadd.f32 %v451_v32, %v450_v29 }
  0x48   : > { %v453_v36 = vmul.f32 0.03125, %v443_v33  ;;  %v2421_v33 = vld [vmem:[%s3966_s3 + $0x20] sm:$0xff]  }
  0x49   : > { %2278 = vset.pattern.permute.xlu1 %v2632_v14  ;;  %v454_v39 = vmul.f32 0.03125, %v452_v35 }
  0x4a   : > { %991 = vperm.xlu1 %2278, %v974_v43   ;;  %2345 = vrot.lane.b32.xlu0 %v3977_v21, %s2636_s11  ;;  %v455_v40 = vadd.f32 1e-05, %v453_v36  ;;  %v2422_v36 = vld [vmem:[%s3966_s3 + $0x28] sm:$0xff]  }
  0x4b   : > { %v456_v42 = vadd.f32 1e-05, %v454_v39 }
  0x4c   : > { %2475 = vrsqrt.f32 %v455_v40  ;;  %v2423_v40 = vld [vmem:[%s3966_s3 + $0x30] sm:$0xff]  }
  0x4d   : > { %2477 = vrsqrt.f32 %v456_v42 }
  0x4e   : > { %2279 = vset.pattern.permute.xlu1 %v2637_v48  ;;  %2351 = vrot.lane.b32.xlu0 %v3977_v21, %s2634_s20 }
  0x4f   : > { %1160 = vperm.xlu1 %2279, %v2792_v10  }
  0x52   : > { %1016 = vperm.xlu0 %2277, %v2884_v50  }
  0x53   : > { %2280 = vset.pattern.permute.xlu1 %v2638_v53 }
  0x54   : > { %1343 = vperm.xlu1 %2280, %v2792_v10  }
  0x56   : > { %2360 = vset.pattern.permute.xlu0 %v2637_v48  ;;  %v2476_v45 = vpop.eup %2475 }
  0x57   : > { %1164 = vperm.xlu0 %2360, %v974_v43   ;;  %v2478_v46 = vpop.eup %2477  ;;  %v459_v51 = vmul.f32 %v2476_v45, %v2890_v54  ;;  %v461_v59 = vmul.f32 %v2476_v45, %v2893_v55  ;;  %v465_v54 = vmul.f32 %v2476_v45, %v2929_v3 }
  0x58   : > { %1347 = vperm.xlu1 %2280, %v974_v43   ;;  %v460_v52 = vmul.f32 %v2478_v46, %v2897_v56  ;;  %v462_v60 = vmul.f32 %v2478_v46, %v2900_v57  ;;  %v463_v56 = vmul.f32 %v2476_v45, %v2903_v58  ;;  %v466_v55 = vmul.f32 %v2478_v46, %v2934_v6 }
  0x59   : > { %v464_v57 = vmul.f32 %v2478_v46, %v2915_v62 }
  0x5b   : > { %1180 = vperm.xlu0 %2360, %v2912_v61  }
  0x5c   : > { %2281 = vset.pattern.permute.xlu1 %v3976_v2 }
  0x5d   : > { %1530 = vperm.xlu1 %2281, %v974_v43   ;;  %v555_v43 = vld [vmem:[%s3967_s4 + $0x20] sm:$0xff] }
  0x5f   : > { %1188 = vperm.xlu0 %2360, %v2926_v1  }
  0x61   : > { %2283 = vrot.lane.b32.xlu1 %v3977_v21, %s2634_s20 }
  0x62   : > { %2292 = vset.pattern.permute.xlu1 %v2632_v14 }
  0x63   : > { %2363 = vset.pattern.permute.xlu0 %v2638_v53 }
  0x64   : > { %1351 = vperm.xlu0 %2363, %v975_v12  }
  0x65   : > { %996 = vperm.xlu1 %2292, %v975_v12  }
  0x68   : > { %1359 = vperm.xlu0 %2363, %v2863_v38  }
  0x69   : > { %2293 = vset.pattern.permute.xlu1 %v2637_v48 }
  0x6a   : > { %1168 = vperm.xlu1 %2293, %v975_v12  }
  0x6c   : > { %2365 = vrot.lane.b32.xlu0 %v3977_v21, %s2635_s22 }
  0x6e   : > { %1172 = vperm.xlu1 %2293, %v2820_v19  }
  0x70   : > { %1367 = vperm.xlu0 %2363, %v2884_v50  }
  0x72   : > { %2300 = vrot.lane.b32.xlu1 %v3977_v21, %s2635_s22 }
  0x73   : > { %2304 = vset.pattern.permute.xlu1 %v2638_v53 }
  0x74   : > { %2374 = vset.pattern.permute.xlu0 %v3976_v2 }
  0x75   : > { %609 = vperm.xlu0 %2374, %v559_v25   ;;  %v2417_v25 = vld [vmem:[%s3966_s3] sm:$0xff]  }
  0x76   : > { %1355 = vperm.xlu1 %2304, %v2820_v19  }
  0x79   : > { %619 = vperm.xlu0 %2374, %v561_v28  }
  0x7a   : > { %2306 = vrot.lane.b32.xlu1 %v3977_v21, %s2636_s11 }
  0x7b   : > { %2315 = vset.pattern.permute.xlu1 %v3976_v2 }
  0x7d   : > { %629 = vperm.xlu0 %2374, %v563_v31   ;;  %v2420_v31 = vld [vmem:[%s3966_s3 + $0x18] sm:$0xff]  }
  0x7e   : > { %1534 = vperm.xlu1 %2315, %v975_v12  }
  0x81   : > { %639 = vperm.xlu0 %2374, %v565_v34  }
  0x82   : > { %2322 = vrot.lane.b32.xlu1 %v3977_v21, %s2634_s20 }
  0x83   : > { %2326 = vset.pattern.permute.xlu1 %v2632_v14 }
  0x85   : > { %569 = vperm.xlu0 %2374, %v551_v37  }
  0x86   : > { %1011 = vperm.xlu1 %2326, %v2912_v61  }
  0x89   : > { %579 = vperm.xlu0 %2374, %v553_v41  }
  0x8a   : > { %2327 = vset.pattern.permute.xlu1 %v2637_v48 }
  0x8b   : > { %1176 = vperm.xlu1 %2327, %v2863_v38  }
  0x8d   : > { %589 = vperm.xlu0 %2374, %v555_v43   ;;  %v2424_v43 = vld [vmem:[%s3966_s3 + $0x38] sm:$0xff]  }
  0x8f   : > { %2334 = vrot.lane.b32.xlu1 %v3977_v21, %s2635_s22 }
  0x90   : > { %2338 = vset.pattern.permute.xlu1 %v2638_v53 }
  0x91   : > { %599 = vperm.xlu0 %2374, %v557_v44  }
  0x93   : > { %1363 = vperm.xlu1 %2338, %v2912_v61  }
  0x95   : > { %1526 = vperm.xlu0 %2374, %v2792_v10  }
  0x97   : > { %2340 = vrot.lane.b32.xlu1 %v3977_v21, %s2636_s11 }
  0x98   : > { %v506_v47 = vpop.permute.xlu1 %505  ;;  %v474_v49 = vpop.permute.xlu0 %473  ;;  %2349 = vset.pattern.permute.xlu1 %v3976_v2 }
  0x99   : > { %1538 = vperm.xlu0 %2374, %v2820_v19   ;;  %v491_v10 = vmul.f32 %v474_v49, %v459_v51  ;;  %v492_v63 = vmul.f32 %v474_v49, %v460_v52 }
  0x9b   : > { %1542 = vperm.xlu1 %2349, %v2863_v38   ;;  %v524_v11 = vadd.f32 %v506_v47, %v492_v63  ;;  %v523_v12 = vadd.f32 %v506_v47, %v491_v10 }
  0x9c   : > { %v511_v0 = vpop.permute.xlu1 %510  ;;  %v479_v4 = vpop.permute.xlu0 %478 }
  0x9d   : > { %v493_v5 = vmul.f32 %v479_v4, %v461_v59  ;;  %v494_v7 = vmul.f32 %v479_v4, %v462_v60  ;;  %1546 = vperm.xlu0 %2374, %v2912_v61  }
  0x9f   : > { %v526_v8 = vadd.f32 %v511_v0, %v494_v7  ;;  %v525_v19 = vadd.f32 %v511_v0, %v493_v5  ;;  %2356 = vrot.lane.b32.xlu1 %v3977_v21, %s2634_s20 }
  0xa0   : > { %v489_v38 = vpop.permute.xlu1 %488  ;;  %v484_v9 = vpop.permute.xlu0 %483  ;;  %2361 = vset.pattern.permute.xlu1 %v2632_v14 }
  0xa1   : > { %2382 = vrot.lane.b32.xlu0 %v3977_v21, %s2636_s11  ;;  %v548_v61 = vpack.c.bf16 %v526_v8, %v524_v11  ;;  %v547_v58 = vpack.c.bf16 %v525_v19, %v523_v12  ;;  %v497_v3 = vmul.f32 %v489_v38, %v465_v54  ;;  %v498_v6 = vmul.f32 %v489_v38, %v466_v55 }
  0xa2   : > { %v495_v13 = vmul.f32 %v484_v9, %v463_v56  ;;  %v496_v62 = vmul.f32 %v484_v9, %v464_v57  ;;  %v981_v19 = vlaneseq }
  0xa3   : > { %1021 = vperm.xlu1 %2361, %v2926_v1   ;;  %712 = vmatprep.subr.bf16.mxu0 %v548_v61 }
  0xa4   : > { %v521_v15 = vpop.permute.xlu1 %520  ;;  %v516_v16 = vpop.permute.xlu0 %515  ;;  %713 = vmatpush1.bf16.msra.mxu0 %v547_v58  ;;  %v3135_v61 = vand.u32 127, %v981_v19 }
  0xa5   : > { %v529_v17 = vadd.f32 %v521_v15, %v497_v3  ;;  %v530_v18 = vadd.f32 %v521_v15, %v498_v6  ;;  %v527_v20 = vadd.f32 %v516_v16, %v495_v13  ;;  %v528_v22 = vadd.f32 %v516_v16, %v496_v62  ;;  %1554 = vperm.xlu0 %2374, %v2926_v1  }
  0xa6   : > { %vm1440_vm1 = vcmp.lt.s32.totalorder %v3135_v61, 3  ;;  %vm1074_vm2 = vcmp.lt.s32.totalorder %v3135_v61, 1  ;;  %vm1040_vm3 = vcmp.ge.s32.totalorder %v3135_v61, 1  ;;  %vm1257_vm4 = vcmp.lt.s32.totalorder %v3135_v61, 2 }
  0xa7   : > { %v550_v14 = vpack.c.bf16 %v530_v18, %v528_v22  ;;  %v549_v23 = vpack.c.bf16 %v529_v17, %v527_v20  ;;  %2362 = vset.pattern.permute.xlu1 %v2637_v48  ;;  %vm1223_vm5 = vcmp.ge.s32.totalorder %v3135_v61, 2  ;;  %vm1406_vm6 = vcmp.ge.s32.totalorder %v3135_v61, 3 }
  0xa8   : > { %v3021_v24 = vpop.permute.xlu1 %614  ;;  %1184 = vperm.xlu1 %2362, %v2884_v50  }
  0xa9   : > { %714 = vmatprep.subr.bf16.mxu0 %v550_v14  ;;  %v3093_v44 = vpop.permute.xlu0 %986  ;;  %2388 = vrot.lane.b32.xlu0 %v3977_v21, %s2634_s20 }
  0xaa   : > { %715 = vmatpush1.bf16.msra.mxu0 %v549_v23 }
  0xac   : > { %v3027_v26 = vpop.permute.xlu1 %624  ;;  %2370 = vrot.lane.b32.xlu1 %v3977_v21, %s2635_s22 }
  0xad   : > { %2143 = vmatmul.mubr.msk.bf16.vlgmr.msra.gmra.mrb[0].mxu0 %vm687_vm0, %v2417_v25  ;;  %2375 = vset.pattern.permute.xlu1 %v2638_v53  ;;  %v2419_v53 = vld [vmem:[%s3966_s3 + $0x10] sm:$0xff]   ;;  %v3101_v47 = vpop.permute.xlu0 %2288 }
  0xae   : > { %754 = vmatprep.mubr.bf16.mxu0 %v3976_v2  ;;  %2398 = vrot.lane.b32.xlu0 %v3977_v21, %s2635_s22 }
  0xb0   : > { %v3034_v48 = vpop.permute.xlu1 %634  ;;  %1371 = vperm.xlu1 %2375, %v2926_v1  }
  0xb1   : > { %v3105_v51 = vpop.permute.xlu0 %1001 }
  0xb2   : > { %4015 = vst [vmem:[#allocation12_spill] sm:$0xff] %v3105_v51 }
  0xb4   : > { %v3040_v28 = vpop.permute.xlu1 %644  ;;  %2386 = vset.pattern.permute.xlu1 %v3976_v2 }
  0xb5   : > { %2144 = vmatmul.mubr.msk.bf16.gmra.mrb[4].mxu0 %vm687_vm0, %v2418_v27  ;;  %v3111_v60 = vpop.permute.xlu0 %2295  ;;  %2377 = vrot.lane.b32.xlu1 %v3977_v21, %s2636_s11 }
  0xb6   : > { %764 = vmatprep.mubr.bf16.mxu0 %v3976_v2 }
  0xb8   : > { %v3045_v29 = vpop.permute.xlu1 %574 }
  0xb9   : > { %v3115_v63 = vpop.permute.xlu0 %2311  ;;  %1550 = vperm.xlu1 %2386, %v2884_v50  }
  0xbc   : > { %v3050_v30 = vpop.permute.xlu1 %584 }
  0xbd   : > { %2145 = vmatmul.mubr.msk.bf16.gmra.mrb[8].mxu0 %vm687_vm0, %v2419_v53  ;;  %v3121_v5 = vpop.permute.xlu0 %2317  ;;  %2393 = vrot.lane.b32.xlu1 %v3977_v21, %s2634_s20 }
  0xbe   : > { %774 = vmatprep.mubr.bf16.mxu0 %v3976_v2 }
  0xc0   : > { %v3054_v1 = vpop.permute.xlu1 %594 }
  0xc1   : > { %v3125_v54 = vpop.permute.xlu0 %1006  ;;  %2403 = vrot.lane.b32.xlu1 %v3977_v21, %s2635_s22 }
  0xc2   : > { %4019 = vst [vmem:[#allocation16_spill] sm:$0xff] %v3125_v54 }
  0xc4   : > { %v3059_v32 = vpop.permute.xlu1 %604 }
  0xc5   : > { %2146 = vmatmul.mubr.msk.bf16.gmra.mrb[12].mxu0 %vm687_vm0, %v2420_v31  ;;  %v3129_v55 = vpop.permute.xlu0 %2329 }
  0xc6   : > { %784 = vmatprep.mubr.bf16.mxu0 %v3976_v2 }
  0xc9   : > { %v3066_v34 = vpop.permute.xlu1 %991  ;;  %v2346_v38 = vpop.permute.xlu0 %2345 }
  0xca   : > { %v2348_v9 = vunpack.i.h.bf16 %v2346_v38  ;;  %v2347_v11 = vunpack.i.l.bf16 %v2346_v38 }
  0xcd   : > { %2147 = vmatmul.mubr.msk.bf16.gmra.mrb[16].mxu0 %vm687_vm0, %v2421_v33  ;;  %v2352_v15 = vpop.permute.xlu0 %2351 }
  0xce   : > { %794 = vmatprep.mubr.bf16.mxu0 %v3976_v2  ;;  %v3070_v35 = vpop.permute.xlu1 %1160  ;;  %v2353_v16 = vunpack.i.l.bf16 %v2352_v15  ;;  %v2354_v17 = vunpack.i.h.bf16 %v2352_v15 }
  0xd1   : > { %v3149_v14 = vpop.permute.xlu0 %1016 }
  0xd2   : > { %4026 = vst [vmem:[#allocation23_spill] sm:$0xff] %v3149_v14 }
  0xd3   : > { %v3075_v37 = vpop.permute.xlu1 %1343 }
  0xd5   : > { %2148 = vmatmul.mubr.msk.bf16.gmra.mrb[20].mxu0 %vm687_vm0, %v2422_v36 }
  0xd6   : > { %804 = vmatprep.mubr.bf16.mxu0 %v3976_v2  ;;  %v3161_v27 = vpop.permute.xlu0 %1164 }
  0xd7   : > { %v3079_v39 = vpop.permute.xlu1 %1347 }
  0xda   : > { %v3164_v53 = vpop.permute.xlu0 %1180 }
  0xdb   : > { %4029 = vst [vmem:[#allocation26_spill] sm:$0xff] %v3164_v53  ;;  %v2425_v53 = vld [vmem:[%s3969_s6 + $0x4] ss:$8 sps:$4 sm:$0xff]  }
  0xdc   : > { %v3084_v41 = vpop.permute.xlu1 %1530  ;;  %1805 = vmatprep.subr.bf16.mxu1 %v2425_v53 }
  0xdd   : > { %4011 = vst [vmem:[#allocation8_spill] sm:$0xff] %v3084_v41  ;;  %2149 = vmatmul.mubr.msk.bf16.gmra.mrb[24].mxu0 %vm687_vm0, %v2423_v40 }
  0xde   : > { %814 = vmatprep.mubr.bf16.mxu0 %v3976_v2  ;;  %v3166_v31 = vpop.permute.xlu0 %1188 }
  0xdf   : > { %4030 = vst [vmem:[#allocation27_spill] sm:$0xff] %v3166_v31 }
  0xe0   : > { %v3088_v42 = vpop.permute.xlu1 %2283 }
  0xe3   : > { %v3172_v33 = vpop.permute.xlu0 %1351 }
  0xe4   : > { %v3095_v45 = vpop.permute.xlu1 %996  ;;  %4031 = vst [vmem:[#allocation28_spill] sm:$0xff] %v3172_v33 }
  0xe5   : > { %4012 = vst [vmem:[#allocation9_spill] sm:$0xff] %v3095_v45  ;;  %2150 = vmatmul.mubr.msk.bf16.gmra.mrb[28].mxu0 %vm687_vm0, %v2424_v43 }
  0xe6   : > { %1963 = vmatprep.mubr.bf16.mxu0 %v3976_v2 }
  0xe7   : > { %v3178_v36 = vpop.permute.xlu0 %1359 }
  0xe8   : > { %4032 = vst [vmem:[#allocation29_spill] sm:$0xff] %v3178_v36 }
  0xe9   : > { %v3099_v46 = vpop.permute.xlu1 %1168 }
  0xea   : > { %4013 = vst [vmem:[#allocation10_spill] sm:$0xff] %v3099_v46 }
  0xeb   : > { %v3180_v50 = vpop.permute.xlu0 %2365 }
  0xec   : > { %4033 = vst [vmem:[#allocation30_spill] sm:$0xff] %v3180_v50 }
  0xed   : > { %v3103_v49 = vpop.permute.xlu1 %1172 }
  0xee   : > { %4014 = vst [vmem:[#allocation11_spill] sm:$0xff] %v3103_v49 }
  0xef   : > { %v3182_v40 = vpop.permute.xlu0 %1367 }
  0xf0   : > { %4034 = vst [vmem:[#allocation31_spill] sm:$0xff] %v3182_v40 }
  0xf1   : > { %v3107_v52 = vpop.permute.xlu1 %2300 }
  0xf4   : > { %v610_v43 = vpop.permute.xlu0 %609 }
  0xf5   : > { %v3109_v59 = vpop.permute.xlu1 %1355 }
  0xf6   : > { %4016 = vst [vmem:[#allocation13_spill] sm:$0xff] %v3109_v59 }
  0xf8   : > { %v3184_v19 = vpop.permute.xlu0 %619 }
  0xf9   : > { %v3113_v10 = vpop.permute.xlu1 %2306 }
  0xfc   : > { %v3186_v38 = vpop.permute.xlu0 %629 }
  0xfd   : > { %v3117_v0 = vpop.permute.xlu1 %1534 }
  0xfe   : > { %4017 = vst [vmem:[#allocation14_spill] sm:$0xff] %v3117_v0  ;;  %v2434_v0 = vld [vmem:[%s3969_s6 + $0x34] ss:$8 sps:$4 sm:$0xff]  }
 0x101   : > { %v3119_v4 = vpop.permute.xlu1 %2322 }
 0x105   : > { %v3123_v7 = vpop.permute.xlu1 %1011 }
 0x106   : > { %4018 = vst [vmem:[#allocation15_spill] sm:$0xff] %v3123_v7 }
 0x10a   : > { %v3127_v56 = vpop.permute.xlu1 %1176 }
 0x10b   : > { %4020 = vst [vmem:[#allocation17_spill] sm:$0xff] %v3127_v56 }
 0x10e   : > { %v3131_v57 = vpop.permute.xlu1 %2334 }
 0x10f   : > { %4021 = vst [vmem:[#allocation18_spill] sm:$0xff] %v3131_v57 }
 0x112   : > { %v3133_v8 = vpop.permute.xlu1 %1363 }
 0x113   : > { %4022 = vst [vmem:[#allocation19_spill] sm:$0xff] %v3133_v8 }
 0x116   : > { %v2341_v12 = vpop.permute.xlu1 %2340 }
 0x117   : > { %v2343_v58 = vunpack.i.h.bf16 %v2341_v12  ;;  %v2342_v3 = vunpack.i.l.bf16 %v2341_v12 }
 0x119   : > { %v3140_v6 = vsel %vm1440_vm1, %v2348_v9, %v2343_v58  ;;  %v3144_v13 = vsel %vm1440_vm1, %v2347_v11, %v2342_v3  ;;  %v3188_v9 = vpop.permute.xlu0 %639 }
 0x11a   : > { %4023 = vst [vmem:[#allocation20_spill] sm:$0xff] %v3140_v6  ;;  %4024 = vst [vmem:[#allocation21_spill] sm:$0xff] %v3144_v13  ;;  %v3146_v62 = vpop.permute.xlu1 %1542  ;;  %v2433_v6 = vld [vmem:[%s3969_s6 + $0x20] ss:$8 sps:$4 sm:$0xff]  }
 0x11b   : > { %4025 = vst [vmem:[#allocation22_spill] sm:$0xff] %v3146_v62 }
 0x11d   : > { %v3190_v11 = vpop.permute.xlu0 %569 }
 0x11e   : > { %v2357_v18 = vpop.permute.xlu1 %2356 }
 0x11f   : > { %v2359_v20 = vunpack.i.h.bf16 %v2357_v18  ;;  %v2358_v22 = vunpack.i.l.bf16 %v2357_v18 }
 0x121   : > { %v3153_v23 = vsel %vm1074_vm2, %v2358_v22, %v2353_v16  ;;  %v3157_v25 = vsel %vm1074_vm2, %v2359_v20, %v2354_v17  ;;  %v3192_v12 = vpop.permute.xlu0 %579 }
 0x122   : > { %4027 = vst [vmem:[#allocation24_spill] sm:$0xff] %v3153_v23  ;;  %4028 = vst [vmem:[#allocation25_spill] sm:$0xff] %v3157_v25  ;;  %v3198_v15 = vpop.permute.xlu1 %1021  ;;  %v2428_v23 = vld [vmem:[%s3969_s6 + $0x14] ss:$8 sps:$4 sm:$0xff]  }
 0x123   : > { %4035 = vst [vmem:[#allocation32_spill] sm:$0xff] %v3198_v15 }
 0x125   : > { %v3194_v58 = vpop.permute.xlu0 %589 }
 0x127   : > { %v3210_v2 = vpop.permute.xlu1 %1184 }
 0x128   : > { %4036 = vst [vmem:[#allocation33_spill] sm:$0xff] %v3210_v2  ;;  %v2427_v2 = vld [vmem:[%s3969_s6] ss:$8 sps:$4 sm:$0xff]  }
 0x129   : > { %v3196_v3 = vpop.permute.xlu0 %599  ;;  %1806 = vmatpush1.bf16.msra.mxu1 %v2427_v2  ;;  %v2431_v2 = vld [vmem:[%s3969_s6 + $0x24] ss:$8 sps:$4 sm:$0xff]  }
 0x12a   : > { %1807 = vmatprep.subr.bf16.mxu1 %v2428_v23 }
 0x12b   : > { %v3220_v15 = vpop.permute.xlu1 %2370 }
 0x12c   : > { %4038 = vst [vmem:[#allocation35_spill] sm:$0xff] %v3220_v15 }
 0x12d   : > { %v3204_v18 = vpop.permute.xlu0 %1526 }
 0x12f   : > { %v3229_v25 = vpop.permute.xlu1 %1371 }
 0x130   : > { %4040 = vst [vmem:[#allocation37_spill] sm:$0xff] %v3229_v25  ;;  %v2430_v25 = vld [vmem:[%s3969_s6 + $0x10] ss:$8 sps:$4 sm:$0xff]  }
 0x131   : > { %v3212_v21 = vpop.permute.xlu0 %1538  ;;  %1808 = vmatpush1.bf16.msra.mxu1 %v2430_v25 }
 0x132   : > { %4037 = vst [vmem:[#allocation34_spill] sm:$0xff] %v3212_v21  ;;  %1809 = vmatprep.subr.bf16.mxu1 %v2431_v2 }
 0x133   : > { %v2378_v21 = vpop.permute.xlu1 %2377 }
 0x134   : > { %v2380_v59 = vunpack.i.h.bf16 %v2378_v21  ;;  %v2379_v53 = vunpack.i.l.bf16 %v2378_v21 }
 0x135   : > { %v3224_v7 = vpop.permute.xlu0 %1546  ;;  %1810 = vmatpush1.bf16.msra.mxu1 %v2433_v6  ;;  %v2439_v6 = vld [vmem:[%s3969_s6 + $0x40] ss:$8 sps:$4 sm:$0xff]  }
 0x136   : > { %4039 = vst [vmem:[#allocation36_spill] sm:$0xff] %v3224_v7  ;;  %1811 = vmatprep.subr.bf16.mxu1 %v2434_v0 }
 0x139   : > { %v2383_v7 = vpop.permute.xlu0 %2382 }
 0x13a   : > { %v2385_v15 = vunpack.i.h.bf16 %v2383_v7  ;;  %v2384_v50 = vunpack.i.l.bf16 %v2383_v7 }
 0x13c   : > { %v3258_v49 = vsel %vm1440_vm1, %v2385_v15, %v2380_v59  ;;  %v3262_v7 = vsel %vm1440_vm1, %v2384_v50, %v2379_v53  ;;  %v2436_v59 = vld [vmem:[%s3969_s6 + $0x30] ss:$8 sps:$4 sm:$0xff]   ;;  %v2437_v50 = vld [vmem:[%s3969_s6 + $0x44] ss:$8 sps:$4 sm:$0xff]  }
 0x13d   : > { %4041 = vst [vmem:[#allocation38_spill] sm:$0xff] %v3258_v49  ;;  %4042 = vst [vmem:[#allocation39_spill] sm:$0xff] %v3262_v7  ;;  %1812 = vmatpush1.bf16.msra.mxu1 %v2436_v59  ;;  %v2440_v59 = vld [vmem:[%s3969_s6 + $0x54] ss:$8 sps:$4 sm:$0xff]  }
 0x13e   : > { %1813 = vmatprep.subr.bf16.mxu1 %v2437_v50 }
 0x141   : > { %1814 = vmatpush1.bf16.msra.mxu1 %v2439_v6  ;;  %v3290_v6 = vpop.permute.xlu1 %1550 }
 0x142   : > { %1815 = vmatprep.subr.bf16.mxu1 %v2440_v59  ;;  %4043 = vst [vmem:[#allocation40_spill] sm:$0xff] %v3290_v6 }
 0x180   : > { %v3200_v16 = vpop.f32.mrb[0].mxu0 }
 0x181   : > { %v3202_v17 = vpop.f32.mrb[1].mxu0 }
 0x182   : > { %v3206_v20 = vpop.f32.mrb[2].mxu0 }
 0x183   : > { %v3208_v22 = vpop.f32.mrb[3].mxu0 }
 0x188   : > { %v3214_v40 = vpop.f32.mrb[4].mxu0 }
 0x189   : > { %v3216_v31 = vpop.f32.mrb[5].mxu0 }
 0x18a   : > { %v3218_v14 = vpop.f32.mrb[6].mxu0 }
 0x18b   : > { %v3222_v8 = vpop.f32.mrb[7].mxu0 }
 0x190   : > { %v3234_v62 = vpop.f32.mrb[8].mxu0 }
 0x191   : > { %v3236_v36 = vpop.f32.mrb[9].mxu0 }
 0x192   : > { %v3238_v56 = vpop.f32.mrb[10].mxu0 }
 0x193   : > { %v3240_v54 = vpop.f32.mrb[11].mxu0 }
 0x198   : > { %v3254_v51 = vpop.f32.mrb[12].mxu0 }
 0x199   : > { %v3264_v21 = vpop.f32.mrb[13].mxu0 }
 0x19a   : > { %v3266_v23 = vpop.f32.mrb[14].mxu0 }
 0x19b   : > { %v3268_v25 = vpop.f32.mrb[15].mxu0 }
 0x1a0   : > { %v786_v15 = vpop.f32.mrb[16].mxu0 }
 0x1a1   : > { %v787_v53 = vadd.f32 %v786_v15, %v610_v43  ;;  %v788_v2 = vpop.f32.mrb[17].mxu0  ;;  %v2442_v15 = vld [vmem:[%s3969_s6 + $0x50] ss:$8 sps:$4 sm:$0xff]  }
 0x1a2   : > { %v789_v49 = vadd.f32 %v788_v2, %v610_v43  ;;  %v790_v7 = vpop.f32.mrb[18].mxu0  ;;  %1816 = vmatpush1.bf16.msra.mxu1 %v2442_v15  ;;  %v2394_v2 = vpop.permute.xlu1 %2393 }
 0x1a3   : > { %v2151_v13 = vmul.f32 -1.442695, %v787_v53  ;;  %v791_v33 = vadd.f32 %v790_v7, %v3021_v24  ;;  %v792_v0 = vpop.f32.mrb[19].mxu0  ;;  %v3292_v7 = vpop.permute.xlu0 %1554 }
 0x1a4   : > { %v2152_v45 = vmul.f32 -1.442695, %v789_v49  ;;  %v793_v46 = vadd.f32 %v792_v0, %v3021_v24  ;;  %4044 = vst [vmem:[#allocation41_spill] sm:$0xff] %v3292_v7  ;;  %v2443_v49 = vld [vmem:[%s3969_s6 + $0x64] ss:$8 sps:$4 sm:$0xff]   ;;  %v2395_v7 = vunpack.i.l.bf16 %v2394_v2 }
 0x1a5   : > { %2479 = vpow2.f32 %v2151_v13  ;;  %v2153_v50 = vmul.f32 -1.442695, %v791_v33  ;;  %v2445_v24 = vld [vmem:[%s3969_s6 + $0x60] ss:$8 sps:$4 sm:$0xff]   ;;  %1817 = vmatprep.subr.bf16.mxu1 %v2443_v49 }
 0x1a6   : > { %2481 = vpow2.f32 %v2152_v45  ;;  %v2154_v43 = vmul.f32 -1.442695, %v793_v46  ;;  %1818 = vmatpush1.bf16.msra.mxu1 %v2445_v24 }
 0x1a7   : > { %2483 = vpow2.f32 %v2153_v50  ;;  %v2396_v50 = vunpack.i.h.bf16 %v2394_v2  ;;  %v2389_v6 = vpop.permute.xlu0 %2388 }
 0x1a8   : > { %2485 = vpow2.f32 %v2154_v43  ;;  %v796_v13 = vpop.f32.mrb[20].mxu0  ;;  %v2446_v43 = vld [vmem:[%s3969_s6 + $0x74] ss:$8 sps:$4 sm:$0xff]   ;;  %v2391_v49 = vunpack.i.h.bf16 %v2389_v6  ;;  %v2390_v41 = vunpack.i.l.bf16 %v2389_v6  ;;  %v2449_v6 = vld [vmem:[%s3969_s6 + $0x84] ss:$8 sps:$4 sm:$0xff]  }
 0x1a9   : > { %v797_v33 = vadd.f32 %v796_v13, %v3184_v19  ;;  %v798_v45 = vpop.f32.mrb[21].mxu0  ;;  %1819 = vmatprep.subr.bf16.mxu1 %v2446_v43 }
 0x1aa   : > { %v799_v46 = vadd.f32 %v798_v45, %v3184_v19  ;;  %v800_v53 = vpop.f32.mrb[22].mxu0  ;;  %v2448_v19 = vld [vmem:[%s3969_s6 + $0x70] ss:$8 sps:$4 sm:$0xff]   ;;  %v3312_v45 = vsel %vm1074_vm2, %v2395_v7, %v2390_v41 }
 0x1ab   : > { %v2155_v0 = vmul.f32 -1.442695, %v797_v33  ;;  %v801_v59 = vadd.f32 %v800_v53, %v3027_v26  ;;  %v802_v15 = vpop.f32.mrb[23].mxu0  ;;  %1820 = vmatpush1.bf16.msra.mxu1 %v2448_v19 }
 0x1ac   : > { %v2156_v57 = vmul.f32 -1.442695, %v799_v46  ;;  %v803_v13 = vadd.f32 %v802_v15, %v3027_v26  ;;  %v3316_v46 = vsel %vm1074_vm2, %v2396_v50, %v2391_v49  ;;  %1821 = vmatprep.subr.bf16.mxu1 %v2449_v6 }
 0x1ad   : > { %2487 = vpow2.f32 %v2155_v0  ;;  %v2157_v24 = vmul.f32 -1.442695, %v801_v59 }
 0x1ae   : > { %2489 = vpow2.f32 %v2156_v57  ;;  %v2158_v33 = vmul.f32 -1.442695, %v803_v13  ;;  %v2451_v57 = vld [vmem:[%s3969_s6 + $0x80] ss:$8 sps:$4 sm:$0xff]  }
 0x1af   : > { %v2480_v26 = vpop.eup %2479  ;;  %2491 = vpow2.f32 %v2157_v24  ;;  %1822 = vmatpush1.bf16.msra.mxu1 %v2451_v57 }
 0x1b0   : > { %v2482_v53 = vpop.eup %2481  ;;  %v873_v2 = vadd.f32 1.0, %v2480_v26  ;;  %2493 = vpow2.f32 %v2158_v33  ;;  %v806_v0 = vpop.f32.mrb[24].mxu0 }
 0x1b1   : > { %v2484_v41 = vpop.eup %2483  ;;  %v874_v7 = vadd.f32 1.0, %v2482_v53  ;;  %v807_v59 = vadd.f32 %v806_v0, %v3186_v38  ;;  %v808_v15 = vpop.f32.mrb[25].mxu0  ;;  %v2452_v53 = vld [vmem:[%s3969_s6 + $0x94] ss:$8 sps:$4 sm:$0xff]  }
 0x1b2   : > { %v2486_v50 = vpop.eup %2485  ;;  %2495 = vrcp.f32 %v873_v2  ;;  %v875_v43 = vadd.f32 1.0, %v2484_v41  ;;  %v809_v13 = vadd.f32 %v808_v15, %v3186_v38  ;;  %v810_v49 = vpop.f32.mrb[26].mxu0  ;;  %v2454_v38 = vld [vmem:[%s3969_s6 + $0x90] ss:$8 sps:$4 sm:$0xff]   ;;  %1823 = vmatprep.subr.bf16.mxu1 %v2452_v53 }
 0x1b3   : > { %2497 = vrcp.f32 %v874_v7  ;;  %v876_v19 = vadd.f32 1.0, %v2486_v50  ;;  %v2159_v24 = vmul.f32 -1.442695, %v807_v59  ;;  %v811_v26 = vadd.f32 %v810_v49, %v3034_v48  ;;  %v812_v33 = vpop.f32.mrb[27].mxu0  ;;  %1824 = vmatpush1.bf16.msra.mxu1 %v2454_v38  ;;  %v2455_v7 = vld [vmem:[%s3969_s6 + $0xa4] ss:$8 sps:$4 sm:$0xff]  }
 0x1b4   : > { %2499 = vrcp.f32 %v875_v43  ;;  %v2160_v0 = vmul.f32 -1.442695, %v809_v13  ;;  %v813_v6 = vadd.f32 %v812_v33, %v3034_v48  ;;  %v2457_v50 = vld [vmem:[%s3969_s6 + $0xa0] ss:$8 sps:$4 sm:$0xff]   ;;  %1825 = vmatprep.subr.bf16.mxu1 %v2455_v7  ;;  %v749_v7 = vadd.f32 %v3202_v17, %v3190_v11 }
 0x1b5   : > { %2501 = vrcp.f32 %v876_v19  ;;  %v2161_v57 = vmul.f32 -1.442695, %v811_v26  ;;  %v747_v26 = vadd.f32 %v3200_v16, %v3190_v11 }
 0x1b6   : > { %2503 = vpow2.f32 %v2159_v24  ;;  %v2162_v2 = vmul.f32 -1.442695, %v813_v6 }
 0x1b7   : > { %v2488_v41 = vpop.eup %2487  ;;  %2505 = vpow2.f32 %v2160_v0  ;;  %1826 = vmatpush1.bf16.msra.mxu1 %v2457_v50  ;;  %v751_v50 = vadd.f32 %v3206_v20, %v3045_v29 }
 0x1b8   : > { %v2490_v59 = vpop.eup %2489  ;;  %v877_v15 = vadd.f32 1.0, %v2488_v41  ;;  %2507 = vpow2.f32 %v2161_v57  ;;  %v816_v48 = vpop.f32.mrb[28].mxu0 }
 0x1b9   : > { %v2492_v43 = vpop.eup %2491  ;;  %v878_v13 = vadd.f32 1.0, %v2490_v59  ;;  %2509 = vpow2.f32 %v2162_v2  ;;  %v817_v49 = vadd.f32 %v816_v48, %v3188_v9  ;;  %v818_v19 = vpop.f32.mrb[29].mxu0 }
 0x1ba   : > { %v2494_v24 = vpop.eup %2493  ;;  %2511 = vrcp.f32 %v877_v15  ;;  %v879_v33 = vadd.f32 1.0, %v2492_v43  ;;  %v819_v53 = vadd.f32 %v818_v19, %v3188_v9  ;;  %v820_v0 = vpop.f32.mrb[30].mxu0  ;;  %v2458_v9 = vld [vmem:[%s3969_s6 + $0xb4] ss:$8 sps:$4 sm:$0xff]   ;;  %v2460_v15 = vld [vmem:[%s3969_s6 + $0xb0] ss:$8 sps:$4 sm:$0xff]  }
 0x1bb   : > { %2513 = vrcp.f32 %v878_v13  ;;  %v880_v6 = vadd.f32 1.0, %v2494_v24  ;;  %v2163_v38 = vmul.f32 -1.442695, %v817_v49  ;;  %v821_v57 = vadd.f32 %v820_v0, %v3040_v28  ;;  %v822_v2 = vpop.f32.mrb[31].mxu0  ;;  %1827 = vmatprep.subr.bf16.mxu1 %v2458_v9  ;;  %v2461_v24 = vld [vmem:[%s3969_s6 + $0xc4] ss:$8 sps:$4 sm:$0xff]  }
 0x1bc   : > { %v2496_v41 = vpop.eup %2495  ;;  %2515 = vrcp.f32 %v879_v33  ;;  %v2164_v59 = vmul.f32 -1.442695, %v819_v53  ;;  %v823_v16 = vadd.f32 %v822_v2, %v3040_v28  ;;  %v753_v28 = vadd.f32 %v3208_v22, %v3045_v29  ;;  %1828 = vmatpush1.bf16.msra.mxu1 %v2460_v15 }
 0x1bd   : > { %v2498_v48 = vpop.eup %2497  ;;  %2517 = vrcp.f32 %v880_v6  ;;  %v2165_v43 = vmul.f32 -1.442695, %v821_v57  ;;  %v3356_v13 = vmul.f32 %v2496_v41, %v747_v26  ;;  %v2463_v26 = vld [vmem:[%s3969_s6 + $0xc0] ss:$8 sps:$4 sm:$0xff]   ;;  %1829 = vmatprep.subr.bf16.mxu1 %v2461_v24  ;;  %v757_v57 = vadd.f32 %v3214_v40, %v3192_v12  ;;  %v2464_v41 = vld [vmem:[%s3969_s6 + $0xd4] ss:$8 sps:$4 sm:$0xff]  }
 0x1be   : > { %v2500_v11 = vpop.eup %2499  ;;  %2519 = vpow2.f32 %v2163_v38  ;;  %v2166_v17 = vmul.f32 -1.442695, %v823_v16  ;;  %v3360_v49 = vmul.f32 %v2498_v48, %v749_v7  ;;  %v2466_v40 = vld [vmem:[%s3969_s6 + $0xd0] ss:$8 sps:$4 sm:$0xff]   ;;  %v761_v15 = vadd.f32 %v3218_v14, %v3050_v30  ;;  %v2467_v14 = vld [vmem:[%s3969_s6 + $0xe4] ss:$8 sps:$4 sm:$0xff]  }
 0x1bf   : > { %v2502_v19 = vpop.eup %2501  ;;  %2521 = vpow2.f32 %v2164_v59  ;;  %1225 = vrot.lane.b32.xlu0 %v3356_v13, %s2635_s22  ;;  %1042 = vrot.lane.b32.xlu1 %v3356_v13, %s2634_s20  ;;  %v3366_v20 = vmul.f32 %v2500_v11, %v751_v50  ;;  %v759_v59 = vadd.f32 %v3216_v31, %v3192_v12 }
 0x1c0   : > { %v2504_v29 = vpop.eup %2503  ;;  %2523 = vpow2.f32 %v2165_v43  ;;  %v3371_v22 = vmul.f32 %v2502_v19, %v753_v28  ;;  %1830 = vmatpush1.bf16.msra.mxu1 %v2463_v26  ;;  %v763_v43 = vadd.f32 %v3222_v8, %v3050_v30  ;;  %v2469_v30 = vld [vmem:[%s3969_s6 + $0xe0] ss:$8 sps:$4 sm:$0xff]  }
 0x1c1   : > { %v2506_v33 = vpop.eup %2505  ;;  %v881_v53 = vadd.f32 1.0, %v2504_v29  ;;  %2525 = vpow2.f32 %v2166_v17  ;;  %1831 = vmatprep.subr.bf16.mxu1 %v2464_v41 }
 0x1c2   : > { %v2508_v0 = vpop.eup %2507  ;;  %v882_v6 = vadd.f32 1.0, %v2506_v33 }
 0x1c3   : > { %v2510_v38 = vpop.eup %2509  ;;  %2527 = vrcp.f32 %v881_v53  ;;  %v883_v2 = vadd.f32 1.0, %v2508_v0  ;;  %1241 = vrot.lane.b32.xlu0 %v3360_v49, %s2635_s22  ;;  %1408 = vrot.lane.b32.xlu1 %v3356_v13, %s2636_s11  ;;  %v2470_v53 = vld [vmem:[%s3969_s6 + $0xf4] ss:$8 sps:$4 sm:$0xff]   ;;  %v767_v0 = vadd.f32 %v3234_v62, %v3194_v58 }
 0x1c4   : > { %v2512_v7 = vpop.eup %2511  ;;  %2529 = vrcp.f32 %v882_v6  ;;  %v884_v16 = vadd.f32 1.0, %v2510_v38  ;;  %1832 = vmatpush1.bf16.msra.mxu1 %v2466_v40  ;;  %v2472_v38 = vld [vmem:[%s3969_s6 + $0xf0] ss:$8 sps:$4 sm:$0xff]  }
 0x1c5   : > { %v2514_v9 = vpop.eup %2513  ;;  %2531 = vrcp.f32 %v883_v2  ;;  %v3392_v48 = vmul.f32 %v2512_v7, %v757_v57  ;;  %1833 = vmatprep.subr.bf16.mxu1 %v2467_v14  ;;  %v769_v2 = vadd.f32 %v3236_v36, %v3194_v58  ;;  %v771_v7 = vadd.f32 %v3238_v56, %v3054_v1 }
 0x1c6   : > { %v2516_v50 = vpop.eup %2515  ;;  %2533 = vrcp.f32 %v884_v16  ;;  %v3396_v31 = vmul.f32 %v2514_v9, %v759_v59  ;;  %v773_v16 = vadd.f32 %v3240_v54, %v3054_v1  ;;  %v777_v1 = vadd.f32 %v3254_v51, %v3196_v3 }
 0x1c7   : > { %v2518_v12 = vpop.eup %2517  ;;  %1044 = vrot.lane.b32.xlu0 %v3366_v20, %s2634_s20  ;;  %1058 = vrot.lane.b32.xlu1 %v3360_v49, %s2634_s20  ;;  %v3402_v11 = vmul.f32 %v2516_v50, %v761_v15  ;;  %v779_v9 = vadd.f32 %v3264_v21, %v3196_v3  ;;  %v781_v50 = vadd.f32 %v3266_v23, %v3059_v32  ;;  %v1890_v23 = vld [vmem:[%s3971_s8] sm:$0xff] }
 0x1c8   : > { %v2520_v28 = vpop.eup %2519  ;;  %v3407_v17 = vmul.f32 %v2518_v12, %v763_v43  ;;  %1834 = vmatpush1.bf16.msra.mxu1 %v2469_v30  ;;  %v783_v14 = vadd.f32 %v3268_v25, %v3059_v32  ;;  %v4045_v32 = vmov 0.0   ;;  %v1892_v25 = vld [vmem:[%s3971_s8 + $0x10] sm:$0xff]  ;;  %v1984_v30 = vld [vmem:[%s3972_s9] sm:$0xff] }
 0x1c9   : > { %v2522_v8 = vpop.eup %2521  ;;  %v885_v19 = vadd.f32 1.0, %v2520_v28  ;;  %1835 = vmatprep.subr.bf16.mxu1 %v2470_v53 }
 0x1ca   : > { %v2524_v24 = vpop.eup %2523  ;;  %v886_v29 = vadd.f32 1.0, %v2522_v8  ;;  %v1986_v8 = vld [vmem:[%s3972_s9 + $0x10] sm:$0xff] }
 0x1cb   : > { %v2526_v26 = vpop.eup %2525  ;;  %2535 = vrcp.f32 %v885_v19  ;;  %v887_v33 = vadd.f32 1.0, %v2524_v24  ;;  %1410 = vrot.lane.b32.xlu0 %v3366_v20, %s2636_s11  ;;  %1424 = vrot.lane.b32.xlu1 %v3360_v49, %s2636_s11  ;;  %v3546_v19 = vpop.permute.xlu1 %2403 }
 0x1cc   : > { %2537 = vrcp.f32 %v886_v29  ;;  %v888_v6 = vadd.f32 1.0, %v2526_v26  ;;  %1836 = vmatpush1.bf16.msra.mxu1 %v2472_v38  ;;  %v3548_v24 = vpop.permute.xlu0 %2398  ;;  %v2285_v38 = vunpack.i.l.bf16 %v3088_v42 }
 0x1cd   : > { %v2528_v57 = vpop.eup %2527  ;;  %2539 = vrcp.f32 %v887_v33  ;;  %v1891_v33 = vld [vmem:[%s3971_s8 + $0x8] sm:$0xff] }
 0x1ce   : > { %v2530_v41 = vpop.eup %2529  ;;  %2541 = vrcp.f32 %v888_v6  ;;  %v3428_v59 = vmul.f32 %v2528_v57, %v767_v0  ;;  %v2290_v6 = vunpack.i.l.bf16 %v3101_v47  ;;  %v1893_v57 = vld [vmem:[%s3971_s8 + $0x18] sm:$0xff] }
 0x1cf   : > { %v2532_v62 = vpop.eup %2531  ;;  %1060 = vrot.lane.b32.xlu0 %v3371_v22, %s2634_s20  ;;  %1227 = vrot.lane.b32.xlu1 %v3366_v20, %s2635_s22  ;;  %v3436_v36 = vmul.f32 %v2530_v41, %v769_v2 }
 0x1d0   : > { %v2534_v58 = vpop.eup %2533  ;;  %v3438_v40 = vmul.f32 %v2532_v62, %v771_v7 }
 0x1d1   : > { %v3440_v56 = vmul.f32 %v2534_v58, %v773_v16  ;;  %v2291_v16 = vunpack.i.h.bf16 %v3101_v47  ;;  %v2286_v58 = vunpack.i.h.bf16 %v3088_v42  ;;  %v1985_v47 = vld [vmem:[%s3972_s9 + $0x8] sm:$0xff]  ;;  %v2313_v42 = vunpack.i.l.bf16 %v3115_v63 }
 0x1d3   : > { %1426 = vrot.lane.b32.xlu0 %v3371_v22, %s2636_s11  ;;  %1243 = vrot.lane.b32.xlu1 %v3371_v22, %s2635_s22 }
 0x1d5   : > { %v2536_v54 = vpop.eup %2535 }
 0x1d6   : > { %v2538_v15 = vpop.eup %2537  ;;  %v3452_v43 = vmul.f32 %v2536_v54, %v777_v1  ;;  %v2298_v1 = vunpack.i.h.bf16 %v3111_v60  ;;  %v2297_v54 = vunpack.i.l.bf16 %v3111_v60 }
 0x1d7   : > { %v2540_v12 = vpop.eup %2539  ;;  %1062 = vrot.lane.b32.xlu0 %v3396_v31, %s2634_s20  ;;  %1046 = vrot.lane.b32.xlu1 %v3392_v48, %s2634_s20  ;;  %v3460_v51 = vmul.f32 %v2538_v15, %v779_v9  ;;  %v2314_v9 = vunpack.i.h.bf16 %v3115_v63  ;;  %v2303_v15 = vunpack.i.h.bf16 %v3107_v52  ;;  %v2309_v63 = vunpack.i.h.bf16 %v3113_v10 }
 0x1d8   : > { %v2542_v28 = vpop.eup %2541  ;;  %v3462_v3 = vmul.f32 %v2540_v12, %v781_v50  ;;  %v2302_v50 = vunpack.i.l.bf16 %v3107_v52  ;;  %v1131_v12 = vsel %vm1074_vm2, %v2290_v6, %v2285_v38  ;;  %v2319_v52 = vunpack.i.l.bf16 %v3121_v5  ;;  %v1987_v38 = vld [vmem:[%s3972_s9 + $0x18] sm:$0xff] }
 0x1d9   : > { %v3464_v21 = vmul.f32 %v2542_v28, %v783_v14 }
 0x1db   : > { %1245 = vrot.lane.b32.xlu0 %v3396_v31, %s2635_s22  ;;  %1229 = vrot.lane.b32.xlu1 %v3392_v48, %s2635_s22 }
 0x1df   : > { %1414 = vrot.lane.b32.xlu0 %v3402_v11, %s2636_s11  ;;  %1412 = vrot.lane.b32.xlu1 %v3392_v48, %s2636_s11 }
 0x1e3   : > { %1430 = vrot.lane.b32.xlu0 %v3407_v17, %s2636_s11  ;;  %1428 = vrot.lane.b32.xlu1 %v3396_v31, %s2636_s11 }
 0x1e7   : > { %1066 = vrot.lane.b32.xlu0 %v3436_v36, %s2634_s20  ;;  %1048 = vrot.lane.b32.xlu1 %v3402_v11, %s2634_s20 }
 0x1eb   : > { %1249 = vrot.lane.b32.xlu0 %v3436_v36, %s2635_s22  ;;  %1231 = vrot.lane.b32.xlu1 %v3402_v11, %s2635_s22 }
 0x1ef   : > { %1418 = vrot.lane.b32.xlu0 %v3438_v40, %s2636_s11  ;;  %1064 = vrot.lane.b32.xlu1 %v3407_v17, %s2634_s20 }
 0x1f3   : > { %1434 = vrot.lane.b32.xlu0 %v3440_v56, %s2636_s11  ;;  %1247 = vrot.lane.b32.xlu1 %v3407_v17, %s2635_s22 }
 0x1f7   : > { %1237 = vrot.lane.b32.xlu0 %v3452_v43, %s2635_s22  ;;  %1050 = vrot.lane.b32.xlu1 %v3428_v59, %s2634_s20 }
 0x1fb   : > { %1420 = vrot.lane.b32.xlu0 %v3452_v43, %s2636_s11  ;;  %1233 = vrot.lane.b32.xlu1 %v3428_v59, %s2635_s22 }
 0x1ff   : > { %1070 = vrot.lane.b32.xlu0 %v3460_v51, %s2634_s20  ;;  %1416 = vrot.lane.b32.xlu1 %v3428_v59, %s2636_s11 }
 0x203   : > { %1253 = vrot.lane.b32.xlu0 %v3460_v51, %s2635_s22  ;;  %1432 = vrot.lane.b32.xlu1 %v3436_v36, %s2636_s11 }
 0x207   : > { %1436 = vrot.lane.b32.xlu0 %v3460_v51, %s2636_s11  ;;  %1052 = vrot.lane.b32.xlu1 %v3438_v40, %s2634_s20 }
 0x20b   : > { %2408 = vrot.lane.b32.xlu0 %v4045_v32, %s2636_s11  ;;  %1235 = vrot.lane.b32.xlu1 %v3438_v40, %s2635_s22 }
 0x20f   : > { %1896 = vperm.xlu0 %2374, %v1890_v23   ;;  %1068 = vrot.lane.b32.xlu1 %v3440_v56, %s2634_s20  ;;  %v2331_v23 = vunpack.i.l.bf16 %v3129_v55 }
 0x213   : > { %1906 = vperm.xlu0 %2374, %v1892_v25   ;;  %1251 = vrot.lane.b32.xlu1 %v3440_v56, %s2635_s22 }
 0x217   : > { %1990 = vperm.xlu0 %2374, %v1984_v30   ;;  %1054 = vrot.lane.b32.xlu1 %v3452_v43, %s2634_s20  ;;  %v2308_v30 = vunpack.i.l.bf16 %v3113_v10  ;;  %v1315_v10 = vsel %vm1257_vm4, %v2303_v15, %v2298_v1 }
 0x21b   : > { %2000 = vperm.xlu0 %2374, %v1986_v8   ;;  %1056 = vrot.lane.b32.xlu1 %v3462_v3, %s2634_s20  ;;  %v1025_v8 = vmul.f32 %v3093_v44, %v3360_v49 }
 0x21f   : > { %1239 = vrot.lane.b32.xlu1 %v3462_v3, %s2635_s22 }
 0x223   : > { %1422 = vrot.lane.b32.xlu1 %v3462_v3, %s2636_s11 }
 0x227   : > { %1072 = vrot.lane.b32.xlu1 %v3464_v21, %s2634_s20  ;;  %s2132_s20 = sshll.u32 %s375_s19, 6 }
 0x22b   : > { %1255 = vrot.lane.b32.xlu1 %v3464_v21, %s2635_s22  ;;  %s3892_s22 = scalar_lea.vmem [#allocation3], %s2132_s20 }
 0x22c   : > { %s2048_s24 = sshll.u32 %s3892_s22, 4  ;;  %s3910_s24 = int_to_ptr.vmem [resolvable:$true] %s2048_s24 }
 0x22d   : > { %s2551_s30 = scalar_lea.vmem %s3910_s24, 1024  ;;  %p2558_p1 = scmp.lt.s32.totalorder %s3910_s24, %s2556_s21 }
 0x22e   : > { %p2552_p12 = scmp.ne.s32.totalorder %s3910_s24, %s2551_s30  ;;  %p2559_p2 = scmp.lt.s32.totalorder %s2557_s12, %s2551_s30 }
 0x22f   : > { %1438 = vrot.lane.b32.xlu1 %v3464_v21, %s2636_s11 }
 0x230   : > { %p2553_p13 = pnand %p2552_p12, %p2737_p4  ;;  %p2560_p3 = por %p2559_p2, %p2558_p1 }
 0x231   : > { %v1226_v29 = vpop.permute.xlu0 %1225  ;;  %v1043_v26 = vpop.permute.xlu1 %1042 }
 0x232   : > { %p2554_p0 = pneg %p2553_p13 }
 0x233   : > { %2413 = vrot.lane.b32.xlu1 %v4045_v32, %s2636_s11  ;;  %s2209_s11 = sshll.u32 %s2621_s16, 10 }
 0x234   : > { %s3908_s16 = scalar_lea.hbm %s3973_s10, %s2209_s11  ;;  %p2561_p5 = pnand %p2560_p3, %p2554_p0 }
 0x235   : > { %v1242_v53 = vpop.permute.xlu0 %1241  ;;  %v1409_v0 = vpop.permute.xlu1 %1408 }
 0x236   : > { %v1266_v25 = vsel %vm1257_vm4, %v1242_v53, %v1226_v29  ;;  %v1258_v49 = vsel %vm1257_vm4, %v1226_v29, %v1242_v53  ;;  %v1497_v53 = vsel %vm1440_vm1, %v2313_v42, %v2308_v30 }
 0x237   : > { %1901 = vperm.xlu1 %2386, %v1891_v33   ;;  %v1314_v33 = vsel %vm1257_vm4, %v2302_v50, %v2297_v54  ;;  %v1498_v54 = vsel %vm1440_vm1, %v2314_v9, %v2309_v63  ;;  %v1375_v15 = vmul.f32 %v3075_v37, %v1258_v49  ;;  %v4046_v49 = vld [vmem:[#allocation8_spill] sm:$0xff] }
 0x239   : > { %v1045_v2 = vpop.permute.xlu0 %1044  ;;  %v1059_v41 = vpop.permute.xlu1 %1058 }
 0x23a   : > { %v1075_v7 = vsel %vm1074_vm2, %v1043_v26, %v1059_v41  ;;  %v1083_v62 = vsel %vm1074_vm2, %v1059_v41, %v1043_v26  ;;  %v1132_v26 = vsel %vm1074_vm2, %v2291_v16, %v2286_v58  ;;  %v1024_v41 = vmul.f32 %v3093_v44, %v3356_v13 }
 0x23b   : > { %1911 = vperm.xlu1 %2386, %v1893_v57   ;;  %v1143_v60 = vsel %vm1040_vm3, %v1083_v62, %v1131_v12  ;;  %v1192_v14 = vmul.f32 %v3070_v35, %v1075_v7  ;;  %v1326_v57 = vsel %vm1223_vm5, %v1266_v25, %v1314_v33 }
 0x23c   : > { %v1191_v6 = vmul.f32 %v3070_v35, %v1143_v60  ;;  %v1374_v12 = vmul.f32 %v3075_v37, %v1326_v57  ;;  %v1026_v37 = vmul.f32 %v3066_v34, %v3366_v20 }
 0x23d   : > { %v1411_v28 = vpop.permute.xlu0 %1410  ;;  %v1425_v32 = vpop.permute.xlu1 %1424  ;;  %v1208_v7 = vadd.f32 %v1192_v14, %v1025_v8 }
 0x23e   : > { %v1441_v16 = vsel %vm1440_vm1, %v1409_v0, %v1425_v32  ;;  %v1449_v58 = vsel %vm1440_vm1, %v1425_v32, %v1409_v0  ;;  %v2324_v0 = vunpack.i.l.bf16 %v3119_v4  ;;  %v1207_v50 = vadd.f32 %v1191_v6, %v1024_v41 }
 0x23f   : > { %1995 = vperm.xlu1 %2386, %v1985_v47   ;;  %v1509_v47 = vsel %vm1406_vm6, %v1449_v58, %v1497_v53  ;;  %v1558_v42 = vmul.f32 %v3204_v18, %v1441_v16  ;;  %v1391_v63 = vadd.f32 %v1375_v15, %v1208_v7 }
 0x240   : > { %v1390_v6 = vadd.f32 %v1374_v12, %v1207_v50 }
 0x241   : > { %v1061_v35 = vpop.permute.xlu0 %1060  ;;  %v1228_v62 = vpop.permute.xlu1 %1227  ;;  %v1574_v58 = vadd.f32 %v1558_v42, %v1391_v63 }
 0x242   : > { %v1076_v1 = vsel %vm1074_vm2, %v1045_v2, %v1061_v35  ;;  %v1084_v29 = vsel %vm1074_vm2, %v1061_v35, %v1045_v2  ;;  %v1027_v2 = vmul.f32 %v3066_v34, %v3371_v22  ;;  %v4047_v35 = vld [vmem:[#allocation18_spill] sm:$0xff] }
 0x243   : > { %v1145_v44 = vsel %vm1040_vm3, %v1084_v29, %v1132_v26  ;;  %v1194_v13 = vmul.f32 %v3161_v27, %v1076_v1  ;;  %2005 = vperm.xlu1 %2386, %v1987_v38   ;;  %v1557_v26 = vmul.f32 %v3204_v18, %v1509_v47  ;;  %v1133_v18 = vsel %vm1074_vm2, %v2324_v0, %v2319_v52  ;;  %v4049_v52 = vld [vmem:[#allocation9_spill] sm:$0xff] }
 0x244   : > { %v1193_v60 = vmul.f32 %v3161_v27, %v1145_v44  ;;  %v1028_v0 = vmul.f32 %v4049_v52, %v3392_v48 }
 0x245   : > { %v1427_v14 = vpop.permute.xlu0 %1426  ;;  %v1244_v32 = vpop.permute.xlu1 %1243  ;;  %v1210_v30 = vadd.f32 %v1194_v13, %v1027_v2  ;;  %v1573_v50 = vadd.f32 %v1557_v26, %v1390_v6  ;;  %v2320_v6 = vunpack.i.h.bf16 %v3121_v5 }
 0x246   : > { %v1442_v9 = vsel %vm1440_vm1, %v1411_v28, %v1427_v14  ;;  %v1450_v25 = vsel %vm1440_vm1, %v1427_v14, %v1411_v28  ;;  %v1259_v22 = vsel %vm1257_vm4, %v1228_v62, %v1244_v32  ;;  %v1267_v8 = vsel %vm1257_vm4, %v1244_v32, %v1228_v62  ;;  %v4050_v32 = vld [vmem:[#allocation28_spill] sm:$0xff] }
 0x247   : > { %v1377_v27 = vmul.f32 %v3079_v39, %v1259_v22  ;;  %v1511_v33 = vsel %vm1406_vm6, %v1450_v25, %v1498_v54  ;;  %v1328_v28 = vsel %vm1223_vm5, %v1267_v8, %v1315_v10  ;;  %v1209_v38 = vadd.f32 %v1193_v60, %v1026_v37  ;;  %v4051_v37 = vld [vmem:[#allocation21_spill] sm:$0xff] }
 0x248   : > { %v1560_v57 = vmul.f32 %v4046_v49, %v1442_v9  ;;  %v1376_v34 = vmul.f32 %v3079_v39, %v1328_v28  ;;  %v2336_v62 = vunpack.i.l.bf16 %v4047_v35  ;;  %v1559_v10 = vmul.f32 %v4046_v49, %v1511_v33  ;;  %v4048_v39 = vld [vmem:[#allocation10_spill] sm:$0xff] }
 0x249   : > { %v1063_v20 = vpop.permute.xlu0 %1062  ;;  %v1047_v41 = vpop.permute.xlu1 %1046  ;;  %v1393_v7 = vadd.f32 %v1377_v27, %v1210_v30  ;;  %v4052_v30 = vld [vmem:[#allocation14_spill] sm:$0xff] }
 0x24a   : > { %v1085_v16 = vsel %vm1074_vm2, %v1063_v20, %v1047_v41  ;;  %v1392_v1 = vadd.f32 %v1376_v34, %v1209_v38  ;;  %v1316_v12 = vsel %vm1257_vm4, %v2336_v62, %v2331_v23  ;;  %v2325_v38 = vunpack.i.h.bf16 %v3119_v4 }
 0x24b   : > { %v1147_v29 = vsel %vm1040_vm3, %v1085_v16, %v1133_v18  ;;  %v1576_v53 = vadd.f32 %v1560_v57, %v1393_v7  ;;  %v1077_v49 = vsel %vm1074_vm2, %v1047_v41, %v1063_v20  ;;  %v2332_v34 = vunpack.i.h.bf16 %v3129_v55  ;;  %v4053_v41 = vld [vmem:[#allocation11_spill] sm:$0xff] }
 0x24c   : > { %v1195_v44 = vmul.f32 %v4048_v39, %v1147_v29  ;;  %v1575_v2 = vadd.f32 %v1559_v10, %v1392_v1  ;;  %v2337_v7 = vunpack.i.h.bf16 %v4047_v35  ;;  %v1196_v16 = vmul.f32 %v4048_v39, %v1077_v49  ;;  %v4054_v39 = vld [vmem:[#allocation12_spill] sm:$0xff] }
 0x24d   : > { %v1246_v13 = vpop.permute.xlu0 %1245  ;;  %v1230_v54 = vpop.permute.xlu1 %1229  ;;  %v1606_v15 = vpack.c.bf16 %v1576_v53, %v1574_v58  ;;  %v1134_v58 = vsel %vm1074_vm2, %v2325_v38, %v2320_v6  ;;  %v1029_v10 = vmul.f32 %v4049_v52, %v3396_v31  ;;  %v4055_v52 = vld [vmem:[#allocation20_spill] sm:$0xff] }
 0x24e   : > { %v1268_v47 = vsel %vm1257_vm4, %v1246_v13, %v1230_v54  ;;  %v1605_v60 = vpack.c.bf16 %v1575_v2, %v1573_v50  ;;  %v1211_v14 = vadd.f32 %v1195_v44, %v1028_v0  ;;  %v1260_v62 = vsel %vm1257_vm4, %v1230_v54, %v1246_v13 }
 0x24f   : > { %v1330_v42 = vsel %vm1223_vm5, %v1268_v47, %v1316_v12  ;;  %1837 = vmatprep.mubr.bf16.mxu1 %v1606_v15  ;;  %v1379_v1 = vmul.f32 %v4050_v32, %v1260_v62  ;;  %v1030_v44 = vmul.f32 %v4054_v39, %v3402_v11  ;;  %v1031_v13 = vmul.f32 %v4054_v39, %v3407_v17  ;;  %v4061_v62 = vld [vmem:[#allocation16_spill] sm:$0xff] }
 0x250   : > { %v1378_v9 = vmul.f32 %v4050_v32, %v1330_v42  ;;  %1838 = vmatmul.mubr.bf16.vlgmr.msra.gmra.mrb[0].mxu1 %v1605_v60  ;;  %v1317_v15 = vsel %vm1257_vm4, %v2337_v7, %v2332_v34  ;;  %v1212_v2 = vadd.f32 %v1196_v16, %v1029_v10  ;;  %v4056_v42 = vld [vmem:[#allocation13_spill] sm:$0xff] }
 0x251   : > { %v1413_v25 = vpop.permute.xlu1 %1412  ;;  %v1415_v27 = vpop.permute.xlu0 %1414  ;;  %v4062_v16 = vld [vmem:[#allocation17_spill] sm:$0xff] }
 0x252   : > { %v1394_v22 = vadd.f32 %v1378_v9, %v1211_v14  ;;  %v1395_v14 = vadd.f32 %v1379_v1, %v1212_v2  ;;  %v4057_v9 = vld [vmem:[#allocation34_spill] sm:$0xff]  ;;  %v4064_v2 = vld [vmem:[#allocation39_spill] sm:$0xff] }
 0x255   : > { %v1429_v48 = vpop.permute.xlu1 %1428  ;;  %v1431_v57 = vpop.permute.xlu0 %1430 }
 0x256   : > { %v1451_v63 = vsel %vm1440_vm1, %v1429_v48, %v1413_v25  ;;  %v1452_v55 = vsel %vm1440_vm1, %v1431_v57, %v1415_v27  ;;  %v1443_v29 = vsel %vm1440_vm1, %v1413_v25, %v1429_v48  ;;  %v1444_v31 = vsel %vm1440_vm1, %v1415_v27, %v1431_v57  ;;  %v4060_v57 = vld [vmem:[#allocation24_spill] sm:$0xff] }
 0x257   : > { %v1513_v23 = vsel %vm1406_vm6, %v1451_v63, %v4051_v37  ;;  %v1515_v0 = vsel %vm1406_vm6, %v1452_v55, %v4055_v52  ;;  %v1562_v12 = vmul.f32 %v4052_v30, %v1443_v29  ;;  %v1564_v25 = vmul.f32 %v4057_v9, %v1444_v31  ;;  %v4063_v29 = vld [vmem:[#allocation29_spill] sm:$0xff]  ;;  %v4065_v52 = vld [vmem:[#allocation22_spill] sm:$0xff] }
 0x258   : > { %v1561_v8 = vmul.f32 %v4052_v30, %v1513_v23  ;;  %v4058_v23 = vld [vmem:[#allocation30_spill] sm:$0xff]  ;;  %v4059_v30 = vld [vmem:[#allocation35_spill] sm:$0xff] }
 0x259   : > { %v1049_v26 = vpop.permute.xlu1 %1048  ;;  %v1067_v53 = vpop.permute.xlu0 %1066  ;;  %v2372_v27 = vunpack.i.l.bf16 %v4059_v30  ;;  %v1578_v6 = vadd.f32 %v1562_v12, %v1395_v14 }
 0x25a   : > { %v3678_v33 = vadd.f32 %v1561_v8, %v1394_v22  ;;  %v2367_v8 = vunpack.i.l.bf16 %v4058_v23 }
 0x25d   : > { %v1232_v28 = vpop.permute.xlu1 %1231  ;;  %v1250_v38 = vpop.permute.xlu0 %1249 }
 0x261   : > { %v1065_v18 = vpop.permute.xlu1 %1064  ;;  %v1419_v39 = vpop.permute.xlu0 %1418 }
 0x262   : > { %v1078_v4 = vsel %vm1074_vm2, %v1049_v26, %v1065_v18  ;;  %v1086_v5 = vsel %vm1074_vm2, %v1065_v18, %v1049_v26  ;;  %v1563_v26 = vmul.f32 %v4057_v9, %v1515_v0  ;;  %v1032_v18 = vmul.f32 %v4061_v62, %v3428_v59 }
 0x263   : > { %v1149_v20 = vsel %vm1040_vm3, %v1086_v5, %v1134_v58  ;;  %v1198_v35 = vmul.f32 %v4053_v41, %v1078_v4 }
 0x264   : > { %v1197_v54 = vmul.f32 %v4053_v41, %v1149_v20  ;;  %v1318_v41 = vsel %vm1257_vm4, %v2372_v27, %v2367_v8  ;;  %v1033_v27 = vmul.f32 %v4061_v62, %v3436_v36 }
 0x265   : > { %v1248_v50 = vpop.permute.xlu1 %1247  ;;  %v1214_v17 = vadd.f32 %v1198_v35, %v1031_v13 }
 0x266   : > { %v1261_v11 = vsel %vm1257_vm4, %v1232_v28, %v1248_v50  ;;  %v1269_v47 = vsel %vm1257_vm4, %v1248_v50, %v1232_v28  ;;  %v1213_v22 = vadd.f32 %v1197_v54, %v1030_v44  ;;  %v1435_v50 = vpop.permute.xlu0 %1434 }
 0x267   : > { %v1381_v60 = vmul.f32 %v4056_v42, %v1261_v11  ;;  %v1332_v32 = vsel %vm1223_vm5, %v1269_v47, %v1317_v15  ;;  %v2368_v47 = vunpack.i.h.bf16 %v4058_v23  ;;  %v1454_v14 = vsel %vm1440_vm1, %v1435_v50, %v1419_v39  ;;  %v4066_v23 = vld [vmem:[#allocation25_spill] sm:$0xff] }
 0x268   : > { %v1380_v48 = vmul.f32 %v4056_v42, %v1332_v32  ;;  %v2373_v42 = vunpack.i.h.bf16 %v4059_v30 }
 0x269   : > { %v1397_v63 = vadd.f32 %v1381_v60, %v1214_v17  ;;  %v1051_v37 = vpop.permute.xlu1 %1050 }
 0x26a   : > { %v1087_v28 = vsel %vm1074_vm2, %v1067_v53, %v1051_v37  ;;  %v1396_v49 = vadd.f32 %v1380_v48, %v1213_v22  ;;  %v1079_v60 = vsel %vm1074_vm2, %v1051_v37, %v1067_v53  ;;  %v4067_v37 = vld [vmem:[#allocation26_spill] sm:$0xff]  ;;  %v1319_v30 = vsel %vm1257_vm4, %v2373_v42, %v2368_v47 }
 0x26b   : > { %v1151_v34 = vsel %vm1040_vm3, %v1087_v28, %v4060_v57  ;;  %v1580_v7 = vadd.f32 %v1564_v25, %v1397_v63  ;;  %v1200_v9 = vmul.f32 %v4062_v16, %v1079_v60  ;;  %v4068_v28 = vld [vmem:[#allocation15_spill] sm:$0xff]  ;;  %v4069_v57 = vld [vmem:[#allocation38_spill] sm:$0xff] }
 0x26c   : > { %v1199_v58 = vmul.f32 %v4062_v16, %v1151_v34  ;;  %v1579_v55 = vadd.f32 %v1563_v26, %v1396_v49  ;;  %v1446_v49 = vsel %vm1440_vm1, %v1419_v39, %v1435_v50  ;;  %v1519_v34 = vsel %vm1406_vm6, %v1454_v14, %v4069_v57  ;;  %v4075_v57 = vld [vmem:[#allocation31_spill] sm:$0xff] }
 0x26d   : > { %v1234_v4 = vpop.permute.xlu1 %1233  ;;  %v1608_v5 = vpack.c.bf16 %v1580_v7, %v1578_v6  ;;  %v1034_v6 = vmul.f32 %v4068_v28, %v3438_v40  ;;  %v1035_v36 = vmul.f32 %v4068_v28, %v3440_v56  ;;  %v4071_v56 = vld [vmem:[#allocation36_spill] sm:$0xff] }
 0x26e   : > { %v1215_v20 = vadd.f32 %v1199_v58, %v1032_v18  ;;  %v1270_v35 = vsel %vm1257_vm4, %v1250_v38, %v1234_v4  ;;  %v1607_v1 = vpack.c.bf16 %v1579_v55, %v3678_v33  ;;  %v3752_v33 = vpop.permute.xlu0 %1237  ;;  %v1262_v25 = vsel %vm1257_vm4, %v1234_v4, %v1250_v38 }
 0x26f   : > { %v1334_v10 = vsel %vm1223_vm5, %v1270_v35, %v1318_v41  ;;  %1847 = vmatprep.mubr.bf16.mxu1 %v1608_v5  ;;  %v1383_v7 = vmul.f32 %v4063_v29, %v1262_v25  ;;  %v1216_v18 = vadd.f32 %v1200_v9, %v1033_v27  ;;  %v4074_v27 = vld [vmem:[#allocation27_spill] sm:$0xff] }
 0x270   : > { %v1382_v59 = vmul.f32 %v4063_v29, %v1334_v10  ;;  %1848 = vmatmul.mubr.bf16.gmra.mrb[4].mxu1 %v1607_v1  ;;  %v1568_v10 = vmul.f32 %v4071_v56, %v1446_v49 }
 0x271   : > { %v1417_v44 = vpop.permute.xlu1 %1416  ;;  %v1399_v1 = vadd.f32 %v1383_v7, %v1216_v18  ;;  %v4076_v7 = vld [vmem:[#allocation32_spill] sm:$0xff] }
 0x272   : > { %v1398_v13 = vadd.f32 %v1382_v59, %v1215_v20  ;;  %v3767_v63 = vpop.permute.xlu0 %1420  ;;  %v4070_v20 = vld [vmem:[#allocation19_spill] sm:$0xff] }
 0x275   : > { %v1433_v54 = vpop.permute.xlu1 %1432 }
 0x276   : > { %v1453_v15 = vsel %vm1440_vm1, %v1433_v54, %v1417_v44  ;;  %v1445_v26 = vsel %vm1440_vm1, %v1417_v44, %v1433_v54  ;;  %v1071_v29 = vpop.permute.xlu0 %1070  ;;  %v1567_v44 = vmul.f32 %v4071_v56, %v1519_v34 }
 0x277   : > { %v1517_v31 = vsel %vm1406_vm6, %v1453_v15, %v4064_v2  ;;  %v1566_v4 = vmul.f32 %v4065_v52, %v1445_v26 }
 0x278   : > { %v1565_v0 = vmul.f32 %v4065_v52, %v1517_v31  ;;  %v4072_v31 = vld [vmem:[#allocation23_spill] sm:$0xff] }
 0x279   : > { %v1053_v11 = vpop.permute.xlu1 %1052  ;;  %v1582_v15 = vadd.f32 %v1566_v4, %v1399_v1  ;;  %v1036_v52 = vmul.f32 %v4072_v31, %v3452_v43  ;;  %v4079_v1 = vld [vmem:[#allocation41_spill] sm:$0xff] }
 0x27a   : > { %v1581_v12 = vadd.f32 %v1565_v0, %v1398_v13  ;;  %v4073_v0 = vld [vmem:[#allocation33_spill] sm:$0xff] }
 0x27d   : > { %v1236_v17 = vpop.permute.xlu1 %1235 }
 0x281   : > { %v1069_v32 = vpop.permute.xlu1 %1068 }
 0x282   : > { %v1080_v22 = vsel %vm1074_vm2, %v1053_v11, %v1069_v32  ;;  %v1088_v48 = vsel %vm1074_vm2, %v1069_v32, %v1053_v11 }
 0x283   : > { %v1153_v53 = vsel %vm1040_vm3, %v1088_v48, %v4066_v23  ;;  %v1202_v8 = vmul.f32 %v4067_v37, %v1080_v22  ;;  %v1037_v23 = vmul.f32 %v4072_v31, %v3460_v51 }
 0x284   : > { %v1201_v38 = vmul.f32 %v4067_v37, %v1153_v53  ;;  %v2406_v53 = vunpack.i.h.bf16 %v3546_v19  ;;  %v2405_v37 = vunpack.i.l.bf16 %v3546_v19  ;;  %v1039_v19 = vmul.f32 %v4076_v7, %v3464_v21 }
 0x285   : > { %v1252_v62 = vpop.permute.xlu1 %1251  ;;  %v1218_v5 = vadd.f32 %v1202_v8, %v1035_v36  ;;  %v4077_v36 = vld [vmem:[#allocation37_spill] sm:$0xff] }
 0x286   : > { %v1217_v16 = vadd.f32 %v1201_v38, %v1034_v6  ;;  %v1263_v40 = vsel %vm1257_vm4, %v1236_v17, %v1252_v62  ;;  %v1271_v58 = vsel %vm1257_vm4, %v1252_v62, %v1236_v17  ;;  %v2401_v6 = vunpack.i.h.bf16 %v3548_v24 }
 0x287   : > { %v1336_v55 = vsel %vm1223_vm5, %v1271_v58, %v1319_v30  ;;  %v1385_v41 = vmul.f32 %v4070_v20, %v1263_v40  ;;  %v2400_v38 = vunpack.i.l.bf16 %v3548_v24 }
 0x288   : > { %v1384_v35 = vmul.f32 %v4070_v20, %v1336_v55  ;;  %v1321_v55 = vsel %vm1257_vm4, %v2406_v53, %v2401_v6 }
 0x289   : > { %v1401_v59 = vadd.f32 %v1385_v41, %v1218_v5  ;;  %v1055_v39 = vpop.permute.xlu1 %1054  ;;  %v1320_v5 = vsel %vm1257_vm4, %v2405_v37, %v2400_v38  ;;  %v4078_v41 = vld [vmem:[#allocation40_spill] sm:$0xff] }
 0x28a   : > { %v1400_v13 = vadd.f32 %v1384_v35, %v1217_v16  ;;  %v1089_v54 = vsel %vm1074_vm2, %v1071_v29, %v1055_v39  ;;  %v1081_v25 = vsel %vm1074_vm2, %v1055_v39, %v1071_v29 }
 0x28b   : > { %v1155_v50 = vsel %vm1040_vm3, %v1089_v54, %v3312_v45  ;;  %v1584_v2 = vadd.f32 %v1568_v10, %v1401_v59  ;;  %v1254_v45 = vpop.permute.xlu0 %1253  ;;  %v1204_v22 = vmul.f32 %v4073_v0, %v1081_v25 }
 0x28c   : > { %v1203_v11 = vmul.f32 %v4073_v0, %v1155_v50  ;;  %v1583_v17 = vadd.f32 %v1567_v44, %v1400_v13  ;;  %v1272_v16 = vsel %vm1257_vm4, %v1254_v45, %v3752_v33  ;;  %v1038_v50 = vmul.f32 %v4076_v7, %v3462_v3 }
 0x28d   : > { %v1057_v47 = vpop.permute.xlu1 %1056  ;;  %v1610_v42 = vpack.c.bf16 %v1584_v2, %v1582_v15  ;;  %v1220_v30 = vadd.f32 %v1204_v22, %v1037_v23  ;;  %v1338_v29 = vsel %vm1223_vm5, %v1272_v16, %v1320_v5 }
 0x28e   : > { %v3809_v60 = vadd.f32 %v1203_v11, %v1036_v52  ;;  %v1609_v14 = vpack.c.bf16 %v1583_v17, %v1581_v12  ;;  %v1264_v12 = vsel %vm1257_vm4, %v3752_v33, %v1254_v45  ;;  %v1386_v0 = vmul.f32 %v4075_v57, %v1338_v29 }
 0x28f   : > { %1857 = vmatprep.mubr.bf16.mxu1 %v1610_v42  ;;  %v1437_v8 = vpop.permute.xlu0 %1436  ;;  %v1387_v34 = vmul.f32 %v4075_v57, %v1264_v12 }
 0x290   : > { %1858 = vmatmul.mubr.bf16.gmra.mrb[8].mxu1 %v1609_v14  ;;  %v1447_v18 = vsel %vm1440_vm1, %v3767_v63, %v1437_v8  ;;  %v1455_v11 = vsel %vm1440_vm1, %v1437_v8, %v3767_v63  ;;  %v1402_v63 = vadd.f32 %v1386_v0, %v3809_v60 }
 0x291   : > { %v1240_v32 = vpop.permute.xlu1 %1239  ;;  %v1403_v40 = vadd.f32 %v1387_v34, %v1220_v30  ;;  %v1570_v35 = vmul.f32 %v4078_v41, %v1447_v18 }
 0x293   : > { %v2409_v56 = vpop.permute.xlu0 %2408  ;;  %v1586_v15 = vadd.f32 %v1570_v35, %v1403_v40 }
 0x294   : > { %v2411_v59 = vunpack.i.h.bf16 %v2409_v56  ;;  %v2410_v39 = vunpack.i.l.bf16 %v2409_v56 }
 0x295   : > { %v1423_v9 = vpop.permute.xlu1 %1422 }
 0x297   : > { %v1897_v5 = vpop.permute.xlu0 %1896 }
 0x299   : > { %v1073_v48 = vpop.permute.xlu1 %1072 }
 0x29a   : > { %v1082_v43 = vsel %vm1074_vm2, %v1057_v47, %v1073_v48  ;;  %v1090_v51 = vsel %vm1074_vm2, %v1073_v48, %v1057_v47 }
 0x29b   : > { %v1206_v26 = vmul.f32 %v4074_v27, %v1082_v43  ;;  %v1157_v58 = vsel %vm1040_vm3, %v1090_v51, %v3316_v46 }
 0x29c   : > { %v1205_v44 = vmul.f32 %v4074_v27, %v1157_v58  ;;  %v2473_v58 = vld [vmem:[%s3970_s7] sm:$0xff]  }
 0x29d   : > { %v1256_v28 = vpop.permute.xlu1 %1255  ;;  %v1222_v4 = vadd.f32 %v1206_v26, %v1039_v19 }
 0x29e   : > { %v1265_v49 = vsel %vm1257_vm4, %v1240_v32, %v1256_v28  ;;  %v1273_v24 = vsel %vm1257_vm4, %v1256_v28, %v1240_v32  ;;  %v1221_v47 = vadd.f32 %v1205_v44, %v1038_v50 }
 0x29f   : > { %v1389_v62 = vmul.f32 %v4077_v36, %v1265_v49  ;;  %v1340_v33 = vsel %vm1223_vm5, %v1273_v24, %v1321_v55 }
 0x2a0   : > { %v1388_v2 = vmul.f32 %v4077_v36, %v1340_v33 }
 0x2a1   : > { %v1439_v21 = vpop.permute.xlu1 %1438  ;;  %v1405_v10 = vadd.f32 %v1389_v62, %v1222_v4  ;;  %v4080_v4 = vmov 0  }
 0x2a2   : > { %v1448_v20 = vsel %vm1440_vm1, %v1423_v9, %v1439_v21  ;;  %v1456_v42 = vsel %vm1440_vm1, %v1439_v21, %v1423_v9  ;;  %v1404_v45 = vadd.f32 %v1388_v2, %v1221_v47  ;;  %v2474_v21 = vld [vmem:[%s3970_s7 + $0x8] sm:$0xff]  }
 0x2a3   : > { %v1572_v46 = vmul.f32 %v4079_v1, %v1448_v20  ;;  %v1907_v20 = vpop.permute.xlu0 %1906 }
 0x2a5   : > { %v1588_v13 = vadd.f32 %v1572_v46, %v1405_v10  ;;  %v2414_v54 = vpop.permute.xlu1 %2413  ;;  %v2543_v10 = vld [vmem:[%s2787_s28] sm:$0xff] }
 0x2a6   : > { %v2416_v31 = vunpack.i.h.bf16 %v2414_v54  ;;  %v2415_v52 = vunpack.i.l.bf16 %v2414_v54  ;;  %v2545_v54 = vld [vmem:[%s2787_s28 + $0x10] sm:$0xff] }
 0x2a7   : > { %v1612_v17 = vpack.c.bf16 %v1588_v13, %v1586_v15  ;;  %v1991_v35 = vpop.permute.xlu0 %1990 }
 0x2a8   : > { %v1504_v14 = vsel %vm1440_vm1, %v2416_v31, %v2411_v59  ;;  %v1503_v3 = vsel %vm1440_vm1, %v2415_v52, %v2410_v39  ;;  %v2544_v59 = vld [vmem:[%s2787_s28 + $0x8] sm:$0xff]  ;;  %v2546_v52 = vld [vmem:[%s2787_s28 + $0x18] sm:$0xff] }
 0x2a9   : > { %v1523_v32 = vsel %vm1406_vm6, %v1456_v42, %v1504_v14  ;;  %v1521_v25 = vsel %vm1406_vm6, %v1455_v11, %v1503_v3  ;;  %1867 = vmatprep.mubr.bf16.mxu1 %v1612_v17  ;;  %v2009_v39 = vmul.f32 %v2544_v59, %v1991_v35 }
 0x2aa   : > { %v1569_v22 = vmul.f32 %v4078_v41, %v1521_v25  ;;  %v1571_v9 = vmul.f32 %v4079_v1, %v1523_v32  ;;  %v2008_v1 = vmul.f32 %v2543_v10, %v1991_v35  ;;  %v2547_v25 = vld [vmem:[%s2787_s28 + $0x20] sm:$0xff] }
 0x2ab   : > { %v2001_v42 = vpop.permute.xlu0 %2000 }
 0x2ac   : > { %v1585_v48 = vadd.f32 %v1569_v22, %v1402_v63  ;;  %v1587_v43 = vadd.f32 %v1571_v9, %v1404_v45  ;;  %v2012_v45 = vmul.f32 %v2547_v25, %v2001_v42  ;;  %v2548_v9 = vld [vmem:[%s2787_s28 + $0x28] sm:$0xff] }
 0x2ae   : > { %v1611_v23 = vpack.c.bf16 %v1587_v43, %v1585_v48  ;;  %v2013_v48 = vmul.f32 %v2548_v9, %v2001_v42 }
 0x2b0   : > { %1868 = vmatmul.mubr.bf16.gmra.mrb[12].mxu1 %v1611_v23 }
 0x2b6   : > { %v1902_v55 = vpop.permute.xlu1 %1901 }
 0x2ba   : > { %v1912_v41 = vpop.permute.xlu1 %1911 }
 0x2be   : > { %v1996_v56 = vpop.permute.xlu1 %1995 }
 0x2bf   : > { %v2010_v15 = vmul.f32 %v2545_v54, %v1996_v56  ;;  %v2011_v0 = vmul.f32 %v2546_v52, %v1996_v56 }
 0x2c2   : > { %v2006_v3 = vpop.permute.xlu1 %2005 }
 0x323   : > { %v1839_v12 = vpop.f32.mrb[0].mxu1 }
 0x324   : > { %v1841_v53 = vpop.f32.mrb[1].mxu1 }
 0x325   : > { %v1843_v37 = vpop.f32.mrb[2].mxu1 }
 0x326   : > { %v1882_v8 = vpack.c.bf16 %v1843_v37, %v1839_v12  ;;  %v1845_v30 = vpop.f32.mrb[3].mxu1  ;;  %v2549_v12 = vld [vmem:[%s2787_s28 + $0x30] sm:$0xff] }
 0x327   : > { %v1883_v27 = vpack.c.bf16 %v1845_v30, %v1841_v53  ;;  %v2014_v53 = vmul.f32 %v2549_v12, %v2006_v3 }
 0x329   : > { %1931 = vmatprep.subr.bf16.mxu0 %v1883_v27  ;;  %v2550_v27 = vld [vmem:[%s2787_s28 + $0x38] sm:$0xff]  ;;  %s3917_s28 = scalar_lea.sflag [#allocation4], %s375_s19 }
 0x32a   : > { %1932 = vmatpush1.bf16.msra.mxu0 %v1882_v8 }
 0x343   : > { %v1849_v61 = vpop.f32.mrb[4].mxu1 }
 0x344   : > { %v1851_v26 = vpop.f32.mrb[5].mxu1 }
 0x345   : > { %v1853_v28 = vpop.f32.mrb[6].mxu1 }
 0x346   : > { %v1884_v60 = vpack.c.bf16 %v1853_v28, %v1849_v61  ;;  %v1855_v6 = vpop.f32.mrb[7].mxu1  ;;  %v2015_v61 = vmul.f32 %v2550_v27, %v2006_v3 }
 0x347   : > { %v1885_v38 = vpack.c.bf16 %v1855_v6, %v1851_v26 }
 0x349   : > { %1933 = vmatprep.subr.bf16.mxu0 %v1885_v38 }
 0x34a   : > { %1934 = vmatpush1.bf16.msra.mxu0 %v1884_v60 }
 0x363   : > { %v1859_v51 = vpop.f32.mrb[8].mxu1 }
 0x364   : > { %v1861_v49 = vpop.f32.mrb[9].mxu1 }
 0x365   : > { %v1863_v57 = vpop.f32.mrb[10].mxu1 }
 0x366   : > { %v1886_v34 = vpack.c.bf16 %v1863_v57, %v1859_v51  ;;  %v1865_v7 = vpop.f32.mrb[11].mxu1 }
 0x367   : > { %v1887_v19 = vpack.c.bf16 %v1865_v7, %v1861_v49 }
 0x369   : > { %1935 = vmatprep.subr.bf16.mxu0 %v1887_v19 }
 0x36a   : > { %1936 = vmatpush1.bf16.msra.mxu0 %v1886_v34 }
 0x383   : > { %v1869_v36 = vpop.f32.mrb[12].mxu1 }
 0x384   : > { %v1871_v62 = vpop.f32.mrb[13].mxu1 }
 0x385   : > { %v1873_v18 = vpop.f32.mrb[14].mxu1 }
 0x386   : > { %v1888_v24 = vpack.c.bf16 %v1873_v18, %v1869_v36  ;;  %v1875_v16 = vpop.f32.mrb[15].mxu1 }
 0x387   : > { %v1889_v40 = vpack.c.bf16 %v1875_v16, %v1871_v62 }
 0x389   : > { %1937 = vmatprep.subr.bf16.mxu0 %v1889_v40 }
 0x38a   : > { %1938 = vmatpush1.bf16.msra.mxu0 %v1888_v24 }
 0x38d   : > { %2201 = vmatmul.mubr.msk.bf16.vlgmr.msra.gmra.mrb[32].mxu0 %vm1924_vm7, %v2473_v58 }
 0x38e   : > { %1973 = vmatprep.mubr.bf16.mxu0 %v4080_v4 }
 0x395   : > { %2202 = vmatmul.mubr.msk.bf16.gmra.mrb[36].mxu0 %vm1924_vm7, %v2474_v21 }
 0x460   : > { %v1965_v33 = vpop.f32.mrb[32].mxu0 }
 0x461   : > { %v1966_v46 = vadd.f32 %v1965_v33, %v1897_v5  ;;  %v1967_v29 = vpop.f32.mrb[33].mxu0 }
 0x462   : > { %v1968_v44 = vadd.f32 %v1967_v29, %v1897_v5  ;;  %v1969_v13 = vpop.f32.mrb[34].mxu0 }
 0x463   : > { %v2016_v50 = vadd.f32 %v2008_v1, %v1966_v46  ;;  %v1970_v2 = vadd.f32 %v1969_v13, %v1902_v55  ;;  %v1971_v31 = vpop.f32.mrb[35].mxu0 }
 0x464   : > { %v2017_v11 = vadd.f32 %v2009_v39, %v1968_v44  ;;  %v1972_v17 = vadd.f32 %v1971_v31, %v1902_v55 }
 0x465   : > { %2024 = vst [vmem:[%s3892_s22] sm:$0xff] %v2016_v50  ;;  %v2018_v47 = vadd.f32 %v2010_v15, %v1970_v2 }
 0x466   : > { %2025 = vst [vmem:[%s3892_s22 + $0x8] sm:$0xff] %v2017_v11  ;;  %v2019_v14 = vadd.f32 %v2011_v0, %v1972_v17 }
 0x467   : > { %2026 = vst [vmem:[%s3892_s22 + $0x10] sm:$0xff] %v2018_v47 }
 0x468   : > { %2027 = vst [vmem:[%s3892_s22 + $0x18] sm:$0xff] %v2019_v14  ;;  %v1975_v32 = vpop.f32.mrb[36].mxu0 }
 0x469   : > { %v1976_v63 = vadd.f32 %v1975_v32, %v1907_v20  ;;  %v1977_v22 = vpop.f32.mrb[37].mxu0 }
 0x46a   : > { %v1978_v43 = vadd.f32 %v1977_v22, %v1907_v20  ;;  %v1979_v23 = vpop.f32.mrb[38].mxu0 }
 0x46b   : > { %v2020_v37 = vadd.f32 %v2012_v45, %v1976_v63  ;;  %v1980_v8 = vadd.f32 %v1979_v23, %v1912_v41  ;;  %v1981_v30 = vpop.f32.mrb[39].mxu0 }
 0x46c   : > { %v2021_v26 = vadd.f32 %v2013_v48, %v1978_v43  ;;  %v1982_v28 = vadd.f32 %v1981_v30, %v1912_v41 }
 0x46d   : > { %2028 = vst [vmem:[%s3892_s22 + $0x20] sm:$0xff] %v2020_v37  ;;  %v2022_v60 = vadd.f32 %v2014_v53, %v1980_v8 }
 0x46e   : > { %2029 = vst [vmem:[%s3892_s22 + $0x28] sm:$0xff] %v2021_v26  ;;  %v2023_v6 = vadd.f32 %v2015_v61, %v1982_v28 }
 0x46f   : > { %2030 = vst [vmem:[%s3892_s22 + $0x30] sm:$0xff] %v2022_v60 }
 0x470   : > { %2031 = vst [vmem:[%s3892_s22 + $0x38] sm:$0xff] %v2023_v6 }
 0x471   : > { %2564 = shalt.err (!%p2561_p5)
}
 0x472   : > { %s2565_s19 = scalar_lea.hbm %s3908_s16, 1024  ;;  %s2569_s11 = scalar_lea.hbm %s3973_s10, 2048 }
 0x473   : > { %p2566_p6 = scmp.ne.s32.totalorder %s3908_s16, %s2565_s19  ;;  %p2570_p10 = scmp.lt.u32.totalorder %s3908_s16, %s3973_s10 }
 0x474   : > { %p2571_p11 = scmp.lt.u32.totalorder %s2569_s11, %s2565_s19  ;;  %p2573_p13 = scmp.lt.u32.totalorder %s2565_s19, %s3908_s16 }
 0x475   : > { %p2567_p7 = pnand %p2566_p6, %p2737_p4 }
 0x476   : > { %p2572_p12 = por %p2571_p11, %p2570_p10 }
 0x477   : > { %p2568_p9 = pneg %p2567_p7 }
 0x478   : > { %p2574_p0 = por %p2573_p13, %p2572_p12 }
 0x47a   : > { %p2575_p1 = pnand %p2574_p0, %p2568_p9 }
 0x47c   : > { %2578 = shalt.err (!%p2575_p1)
}
 0x47d   : > { %s2640_s30 = smov 256   ;;  %s2641_s17 = smov 16  }
 0x47e   : > { %2210 = dma.vmem_to_hbm [thread:$0]  (%p2737_p4), %s3910_s24, 1024, %s3908_s16, %s3917_s28, %s2640_s30, %s2640_s30, %s2641_s17  }
 0x47f PF: > { %p2216_p2 = scmp.ge.s32.totalorder %s2629_s18, 2  ;;  %s2063_s21 = sand.u32 1, %s2609_s13  }
 0x480   : > { %s2064_s12 = scalar_lea.sflag [#allocation4], %s2063_s21 }
 0x481   : > { %p2213_p3 = pnand %p2216_p2, %p2744_p8 }
 0x483   : > { %2604 = dma.done.wait (!%p2213_p3), %s2064_s12, 1024  }
 0x484   : > { %2606 = vsyncadd (!%p2213_p3), %s2064_s12, 4294966272  ;;  %s23_s18 = sadd.s32 1, %s2629_s18   ;;  %s4081_s16 = sld [smem:[#allocation6_spill]] }
 0x485   : > { %p20_p5 = scmp.ge.s32.totalorder %s23_s18, 4   ;;  %s4082_s17 = sld [smem:[#allocation7_spill]] }
 0x486   : > { %s4083_s13 = smov %s2613_s14  ;;  %s4084_s14 = smov %s2617_s15 }
 0x487   : > { %s4085_s15 = smov %s2750_s26  ;;  %22 = sbr.rel (!%p20_p5) target bundleno = 4 (0x4), region = 99 }
 0x48e   :  { %2069 = vsyncpa [#allocation4], 1 }
 0x48f   :  { %2071 = vsyncpa [#allocation4 + $0x1], 1 }

</bundles_post_ra>
